<compile_context>
chip_gen: v7x
topology: tpu7x:2x2x1
jax: 0.10.0
libtpu: 0.0.40
codegen_flags: <defaults>
</compile_context>

<pallas_src>
import numpy as np
import jax
import jax.numpy as jnp
from jax import lax
from jax.experimental import pallas as pl
from jax.experimental.pallas import tpu as pltpu


def _round_up(x, m):
    return ((x + m - 1) // m) * m


# ---------------------------------------------------------------------------
# Pallas kernel builder: hoisted input projection + LSTM recurrence + fused FC
# ---------------------------------------------------------------------------
def _make_qst_kernel(T, Bp, E, H, L):
    H4 = 4 * H

    def kernel(*refs):
        x_ref = refs[0]                                    # (T*Bp, E)   f32
        wih_refs = [refs[1 + 3 * l] for l in range(L)]     # (in_dim,4H) bf16
        whh_refs = [refs[2 + 3 * l] for l in range(L)]     # (H, 4H)     bf16
        b_refs = [refs[3 + 3 * l] for l in range(L)]       # (1, 4H)     f32
        fcw_ref = refs[1 + 3 * L]                          # (2*L*H, Ep) bf16
        fcb_ref = refs[2 + 3 * L]                          # (1, Ep)     f32
        out_ref = refs[3 + 3 * L]                          # (Bp, Ep)    f32
        xg_ref = refs[4 + 3 * L]                           # scratch (T*Bp, 4H) f32

        # --- Hoisted layer-0 input projection (off the recurrent chain) -----
        # tanh + the entire w_ih half of layer 0, for every timestep, in ONE
        # well-utilized matmul; layer-0 bias folded in.
        xt = jnp.tanh(x_ref[...]).astype(jnp.bfloat16)
        xg = jnp.dot(xt, wih_refs[0][...], preferred_element_type=jnp.float32)
        xg_ref[...] = xg + b_refs[0][...]

        # --- Loop-invariant values hoisted out of the recurrence -------------
        whh = [whh_refs[l][...] for l in range(L)]
        wih = [wih_refs[l][...] for l in range(1, L)]
        biases = [jnp.broadcast_to(b_refs[l][...], (Bp, H4)) for l in range(1, L)]

        def gate_math(gates, c_prev):
            # Gate blocks (i, f, o, g), each H lanes: one wide sigmoid + one tanh.
            sig = jax.nn.sigmoid(gates[:, 0:3 * H])
            i_g = sig[:, 0:H]
            f_g = sig[:, H:2 * H]
            o_g = sig[:, 2 * H:3 * H]
            g_g = jnp.tanh(gates[:, 3 * H:4 * H])
            c_new = f_g * c_prev + i_g * g_g
            h_new = o_g * jnp.tanh(c_new)
            return h_new, c_new

        def step(t, carry):
            hs, cs = carry
            row = pl.multiple_of(t * Bp, Bp)
            new_hs, new_cs = [], []
            # Layer 0: only the recurrent (Bp,H)@(H,4H) dot sits on the chain.
            gates = xg_ref[pl.ds(row, Bp), :] + jnp.dot(
                hs[0].astype(jnp.bfloat16), whh[0],
                preferred_element_type=jnp.float32)
            h, c = gate_math(gates, cs[0])
            new_hs.append(h)
            new_cs.append(c)
            for l in range(1, L):
                # Two accumulating dots instead of a per-step lane concat.
                gates = (jnp.dot(h.astype(jnp.bfloat16), wih[l - 1],
                                 preferred_element_type=jnp.float32)
                         + jnp.dot(hs[l].astype(jnp.bfloat16), whh[l],
                                   preferred_element_type=jnp.float32)
                         + biases[l - 1])
                h, c = gate_math(gates, cs[l])
                new_hs.append(h)
                new_cs.append(c)
            return tuple(new_hs), tuple(new_cs)

        zero = jnp.zeros((Bp, H), jnp.float32)
        init = (tuple(zero for _ in range(L)), tuple(zero for _ in range(L)))
        hs, cs = lax.fori_loop(0, T, step, init, unroll=True)

        # --- Fused epilogue: tanh(cat(h0,c0,h1,c1,...)) @ fcW + fcb ---------
        feat = jnp.concatenate(
            [jnp.tanh(v) for l in range(L) for v in (hs[l], cs[l])], axis=1)
        res = jnp.dot(feat.astype(jnp.bfloat16), fcw_ref[...],
                      preferred_element_type=jnp.float32)
        out_ref[...] = (res + jnp.broadcast_to(fcb_ref[...], res.shape)
                        ).astype(out_ref.dtype)

    return kernel


# ---------------------------------------------------------------------------
# One-time weight packing (numpy, NOT per forward call)
# ---------------------------------------------------------------------------
def pack_qst_encoder_params(params):
    L = len(params["lstm"])
    H = params["lstm"][0]["w_hh"].shape[1]
    E = params["emb"].shape[1]
    embed_size = params["fc_w"].shape[0]
    Ep = _round_up(embed_size, 128)
    gate_order = (0, 1, 3, 2)          # PyTorch (i, f, g, o) -> kernel (i, f, o, g)

    layers = []
    for p in params["lstm"]:
        w_ih = np.asarray(p["w_ih"], np.float32)            # (4H, in_dim)
        w_hh = np.asarray(p["w_hh"], np.float32)            # (4H, H)
        bias = np.asarray(p["b_ih"], np.float32) + np.asarray(p["b_hh"], np.float32)
        in_dim = w_ih.shape[1]
        wih_p = np.zeros((in_dim, 4 * H), np.float32)
        whh_p = np.zeros((H, 4 * H), np.float32)
        b_p = np.zeros((1, 4 * H), np.float32)
        for gn, go in enumerate(gate_order):
            wih_p[:, gn * H:(gn + 1) * H] = w_ih[go * H:(go + 1) * H, :].T
            whh_p[:, gn * H:(gn + 1) * H] = w_hh[go * H:(go + 1) * H, :].T
            b_p[0, gn * H:(gn + 1) * H] = bias[go * H:(go + 1) * H]
        layers.append((jnp.asarray(wih_p, jnp.bfloat16),
                       jnp.asarray(whh_p, jnp.bfloat16),
                       jnp.asarray(b_p, jnp.float32)))

    # fc: feat lane order [h0, c0, h1, c1, ...] matches PyTorch's cat + reshape.
    fc_w = np.asarray(params["fc_w"], np.float32)            # (embed_size, 2LH)
    fcw = np.zeros((2 * L * H, Ep), np.float32)
    fcw[:, :embed_size] = fc_w.T
    fcb = np.zeros((1, Ep), np.float32)
    fcb[0, :embed_size] = np.asarray(params["fc_b"], np.float32)

    return dict(emb=jnp.asarray(params["emb"], jnp.float32),
                layers=layers,
                fcw=jnp.asarray(fcw, jnp.bfloat16),
                fcb=jnp.asarray(fcb, jnp.float32),
                L=L, H=H, E=E, embed_size=embed_size, Ep=Ep)


# ---------------------------------------------------------------------------
# Forward wrapper: embedding-gather glue + pallas_call
# ---------------------------------------------------------------------------
def qst_encoder_forward(question, packed):
    """question: (B, T) int32 -> (B, embed_size) f32."""
    B, T = question.shape
    L, H, E = packed["L"], packed["H"], packed["E"]
    Ep, embed_size = packed["Ep"], packed["embed_size"]
    Bp = _round_up(max(B, 8), 8)

    # Embedding gather (glue), time-major, batch padded to a sublane multiple,
    # flattened to (T*Bp, E) so the hoisted input matmul is one big 2-D dot.
    # TODO(synk): fuse the gather into the kernel (scalar-prefetched ids + DMA)
    #             for large vocab / long sequences.
    x = jnp.take(packed["emb"], question, axis=0)             # (B, T, E)
    x = jnp.transpose(x, (1, 0, 2)).astype(jnp.float32)       # (T, B, E)
    x = jnp.pad(x, ((0, 0), (0, Bp - B), (0, 0)))
    x = x.reshape(T * Bp, E)

    args = [x]
    for (wih, whh, b) in packed["layers"]:
        args += [wih, whh, b]
    args += [packed["fcw"], packed["fcb"]]

    resident = sum(int(a.size) * a.dtype.itemsize for a in args)
    resident += Bp * Ep * 4 + T * Bp * 4 * H * 4              # output + scratch
    vmem_limit = int(2 * resident + (4 << 20))                # tiny + headroom

    vmem = pl.BlockSpec(memory_space=pltpu.MemorySpace.VMEM)
    out_full = pl.pallas_call(
        _make_qst_kernel(T, Bp, E, H, L),
        out_shape=jax.ShapeDtypeStruct((Bp, Ep), jnp.float32),
        in_specs=[vmem] * len(args),
        out_specs=vmem,
        scratch_shapes=[pltpu.VMEM((T * Bp, 4 * H), jnp.float32)],
        compiler_params=pltpu.CompilerParams(vmem_limit_bytes=vmem_limit),
    )(*args)
    # TODO(synk): if batch grows, add a grid over Bp tiles with
    #             dimension_semantics=("parallel",) so v7x's second TC is used.
    return out_full[:B, :embed_size]


# ---------------------------------------------------------------------------
# Pure-JAX reference (mirrors PyTorch semantics) for verification
# ---------------------------------------------------------------------------
def qst_encoder_reference(question, params):
    emb_table = params["emb"]
    L = len(params["lstm"])
    H = params["lstm"][0]["w_hh"].shape[1]
    B, T = question.shape

    x = jnp.tanh(jnp.take(emb_table, question, axis=0))   # (B, T, E)
    layer_in = jnp.transpose(x, (1, 0, 2))                # (T, B, E)

    hs, cs = [], []
    for l in range(L):
        p = params["lstm"][l]
        h = jnp.zeros((B, H), jnp.float32)
        c = jnp.zeros((B, H), jnp.float32)
        outs = []
        for t in range(T):
            gates = (layer_in[t] @ p["w_ih"].T + h @ p["w_hh"].T
                     + p["b_ih"] + p["b_hh"])
            i_g = jax.nn.sigmoid(gates[:, 0 * H:1 * H])
            f_g = jax.nn.sigmoid(gates[:, 1 * H:2 * H])
            g_g = jnp.tanh(gates[:, 2 * H:3 * H])
            o_g = jax.nn.sigmoid(gates[:, 3 * H:4 * H])
            c = f_g * c + i_g * g_g
            h = o_g * jnp.tanh(c)
            outs.append(h)
        layer_in = jnp.stack(outs)                        # (T, B, H)
        hs.append(h)
        cs.append(c)

    hidden = jnp.stack(hs)                                # (L, B, H)
    cell = jnp.stack(cs)                                  # (L, B, H)
    feat = jnp.concatenate([hidden, cell], axis=2)        # (L, B, 2H)
    feat = jnp.transpose(feat, (1, 0, 2)).reshape(B, -1)  # (B, 2*L*H)
    feat = jnp.tanh(feat)
    return feat @ params["fc_w"].T + params["fc_b"]


# ---------------------------------------------------------------------------
# Deterministic parameter init + run
# ---------------------------------------------------------------------------
def make_params(key, vocab, word_embed, embed_size, num_layers, hidden):
    keys = jax.random.split(key, 3 + 4 * num_layers)
    emb = jax.random.normal(keys[0], (vocab, word_embed), jnp.float32) * 0.1
    lstm = []
    for l in range(num_layers):
        in_dim = word_embed if l == 0 else hidden
        k = 1.0 / np.sqrt(hidden)
        kk = keys[3 + 4 * l: 3 + 4 * (l + 1)]
        lstm.append(dict(
            w_ih=jax.random.uniform(kk[0], (4 * hidden, in_dim), jnp.float32, -k, k),
            w_hh=jax.random.uniform(kk[1], (4 * hidden, hidden), jnp.float32, -k, k),
            b_ih=jax.random.uniform(kk[2], (4 * hidden,), jnp.float32, -k, k),
            b_hh=jax.random.uniform(kk[3], (4 * hidden,), jnp.float32, -k, k),
        ))
    kf = 1.0 / np.sqrt(2 * num_layers * hidden)
    fc_w = jax.random.uniform(keys[1], (embed_size, 2 * num_layers * hidden),
                              jnp.float32, -kf, kf)
    fc_b = jax.random.uniform(keys[2], (embed_size,), jnp.float32, -kf, kf)
    return dict(emb=emb, lstm=lstm, fc_w=fc_w, fc_b=fc_b)


if __name__ == "__main__":
    qst_vocab_size = 50
    word_embed_size = 32
    embed_size = 32
    num_layers = 2
    hidden_size = 32
    batch, seq = 2, 8

    root = jax.random.PRNGKey(0)
    k_param, k_q = jax.random.split(root)
    params = make_params(k_param, qst_vocab_size, word_embed_size,
                         embed_size, num_layers, hidden_size)
    question = jax.random.randint(k_q, (batch, seq), 0, qst_vocab_size,
                                  dtype=jnp.int32)

    packed = pack_qst_encoder_params(params)   # one-time packing, reused per call

    out = qst_encoder_forward(question, packed)
    out = jax.block_until_ready(out)

    ref = jax.block_until_ready(qst_encoder_reference(question, params))

    assert out.shape == (batch, embed_size), out.shape
    assert bool(jnp.all(jnp.isfinite(out)))
    max_err = float(jnp.max(jnp.abs(out - ref)))
    assert max_err < 1e-2, f"max abs error {max_err}"

    print("KERNEL_OK")
</pallas_src>

<mosaic_0001>
module attributes {stable_mosaic.version = 11 : i64} {
  func.func @kernel(%arg0: memref<64x32xf32, #tpu.memory_space<vmem>>, %arg1: memref<32x128xbf16, #tpu.memory_space<vmem>>, %arg2: memref<32x128xbf16, #tpu.memory_space<vmem>>, %arg3: memref<1x128xf32, #tpu.memory_space<vmem>>, %arg4: memref<32x128xbf16, #tpu.memory_space<vmem>>, %arg5: memref<32x128xbf16, #tpu.memory_space<vmem>>, %arg6: memref<1x128xf32, #tpu.memory_space<vmem>>, %arg7: memref<128x128xbf16, #tpu.memory_space<vmem>>, %arg8: memref<1x128xf32, #tpu.memory_space<vmem>>, %arg9: memref<8x128xf32, #tpu.memory_space<vmem>>, %arg10: memref<64x128xf32, #tpu.memory_space<vmem>>) attributes {dimension_semantics = [], scalar_prefetch = 0 : i64, scratch_operands = 1 : i64, tpu.core_type = #tpu.core_type<tc>} {
    %c0 = arith.constant 0 : index
    %c0_0 = arith.constant 0 : index
    %0 = vector.load %arg0[%c0, %c0_0] : memref<64x32xf32, #tpu.memory_space<vmem>>, vector<64x32xf32>
    %1 = math.tanh %0 : vector<64x32xf32>
    %2 = arith.truncf %1 : vector<64x32xf32> to vector<64x32xbf16>
    %c0_1 = arith.constant 0 : index
    %c0_2 = arith.constant 0 : index
    %3 = vector.load %arg1[%c0_1, %c0_2] : memref<32x128xbf16, #tpu.memory_space<vmem>>, vector<32x128xbf16>
    %cst = arith.constant dense<0.000000e+00> : vector<64x128xf32>
    %4 = tpu.matmul %2, %3, %cst {dimension_numbers = #tpu.dot_dimension_numbers<[1], [0], [0], [1], [0, 0, 1, 1], [], []>} : vector<64x32xbf16>, vector<32x128xbf16>, vector<64x128xf32> -> vector<64x128xf32>
    %c0_3 = arith.constant 0 : index
    %c0_4 = arith.constant 0 : index
    %5 = vector.load %arg3[%c0_3, %c0_4] : memref<1x128xf32, #tpu.memory_space<vmem>>, vector<1x128xf32>
    %6 = vector.broadcast %5 : vector<1x128xf32> to vector<64x128xf32>
    %7 = arith.addf %4, %6 : vector<64x128xf32>
    %c0_5 = arith.constant 0 : index
    %c0_6 = arith.constant 0 : index
    %8 = vector.load %arg10[%c0_5, %c0_6] : memref<64x128xf32, #tpu.memory_space<vmem>>, vector<64x128xf32>
    tpu.vector_store %arg10[%c0_5, %c0_6], %7 {strides = array<i32>} : memref<64x128xf32, #tpu.memory_space<vmem>>, vector<64x128xf32>,
    %c0_7 = arith.constant 0 : index
    %c0_8 = arith.constant 0 : index
    %9 = vector.load %arg2[%c0_7, %c0_8] : memref<32x128xbf16, #tpu.memory_space<vmem>>, vector<32x128xbf16>
    %c0_9 = arith.constant 0 : index
    %c0_10 = arith.constant 0 : index
    %10 = vector.load %arg5[%c0_9, %c0_10] : memref<32x128xbf16, #tpu.memory_space<vmem>>, vector<32x128xbf16>
    %c0_11 = arith.constant 0 : index
    %c0_12 = arith.constant 0 : index
    %11 = vector.load %arg4[%c0_11, %c0_12] : memref<32x128xbf16, #tpu.memory_space<vmem>>, vector<32x128xbf16>
    %c0_13 = arith.constant 0 : index
    %c0_14 = arith.constant 0 : index
    %12 = vector.load %arg6[%c0_13, %c0_14] : memref<1x128xf32, #tpu.memory_space<vmem>>, vector<1x128xf32>
    %13 = vector.shape_cast %12 : vector<1x128xf32> to vector<1x128xf32>
    %14 = vector.broadcast %13 : vector<1x128xf32> to vector<8x128xf32>
    %cst_15 = arith.constant 0.000000e+00 : f32
    %15 = vector.broadcast %cst_15 : f32 to vector<8x32xf32>
    %c0_i32 = arith.constant 0 : i32
    %c8_i32 = arith.constant 8 : i32
    %16 = arith.muli %c0_i32, %c8_i32 : i32
    %17 = tpu.assume_multiple %16, 8 : i32
    %18 = arith.index_cast %17 : i32 to index
    %c0_16 = arith.constant 0 : index
    %19 = vector.load %arg10[%18, %c0_16] : memref<64x128xf32, #tpu.memory_space<vmem>>, vector<8x128xf32>
    %20 = arith.truncf %15 : vector<8x32xf32> to vector<8x32xbf16>
    %cst_17 = arith.constant dense<0.000000e+00> : vector<8x128xf32>
    %21 = tpu.matmul %20, %9, %cst_17 {dimension_numbers = #tpu.dot_dimension_numbers<[1], [0], [0], [1], [0, 0, 1, 1], [], []>} : vector<8x32xbf16>, vector<32x128xbf16>, vector<8x128xf32> -> vector<8x128xf32>
    %22 = arith.addf %19, %21 : vector<8x128xf32>
    %23 = vector.extract_strided_slice %22 {offsets = [0, 0], sizes = [8, 96], strides = [1, 1]} : vector<8x128xf32> to vector<8x96xf32>
    %24 = arith.negf %23 : vector<8x96xf32>
    %25 = math.exp %24 : vector<8x96xf32>
    %cst_18 = arith.constant 1.000000e+00 : f32
    %26 = vector.broadcast %cst_18 : f32 to vector<8x96xf32>
    %27 = arith.addf %26, %25 : vector<8x96xf32>
    %28 = arith.divf %26, %27 : vector<8x96xf32>
    %29 = vector.extract_strided_slice %28 {offsets = [0, 0], sizes = [8, 32], strides = [1, 1]} : vector<8x96xf32> to vector<8x32xf32>
    %30 = vector.extract_strided_slice %28 {offsets = [0, 32], sizes = [8, 32], strides = [1, 1]} : vector<8x96xf32> to vector<8x32xf32>
    %31 = vector.extract_strided_slice %28 {offsets = [0, 64], sizes = [8, 32], strides = [1, 1]} : vector<8x96xf32> to vector<8x32xf32>
    %32 = vector.extract_strided_slice %22 {offsets = [0, 96], sizes = [8, 32], strides = [1, 1]} : vector<8x128xf32> to vector<8x32xf32>
    %33 = math.tanh %32 : vector<8x32xf32>
    %34 = arith.mulf %30, %15 : vector<8x32xf32>
    %35 = arith.mulf %29, %33 : vector<8x32xf32>
    %36 = arith.addf %34, %35 : vector<8x32xf32>
    %37 = math.tanh %36 : vector<8x32xf32>
    %38 = arith.mulf %31, %37 : vector<8x32xf32>
    %39 = arith.truncf %38 : vector<8x32xf32> to vector<8x32xbf16>
    %cst_19 = arith.constant dense<0.000000e+00> : vector<8x128xf32>
    %40 = tpu.matmul %39, %11, %cst_19 {dimension_numbers = #tpu.dot_dimension_numbers<[1], [0], [0], [1], [0, 0, 1, 1], [], []>} : vector<8x32xbf16>, vector<32x128xbf16>, vector<8x128xf32> -> vector<8x128xf32>
    %41 = arith.truncf %15 : vector<8x32xf32> to vector<8x32xbf16>
    %cst_20 = arith.constant dense<0.000000e+00> : vector<8x128xf32>
    %42 = tpu.matmul %41, %10, %cst_20 {dimension_numbers = #tpu.dot_dimension_numbers<[1], [0], [0], [1], [0, 0, 1, 1], [], []>} : vector<8x32xbf16>, vector<32x128xbf16>, vector<8x128xf32> -> vector<8x128xf32>
    %43 = arith.addf %40, %42 : vector<8x128xf32>
    %44 = arith.addf %43, %14 : vector<8x128xf32>
    %45 = vector.extract_strided_slice %44 {offsets = [0, 0], sizes = [8, 96], strides = [1, 1]} : vector<8x128xf32> to vector<8x96xf32>
    %46 = arith.negf %45 : vector<8x96xf32>
    %47 = math.exp %46 : vector<8x96xf32>
    %cst_21 = arith.constant 1.000000e+00 : f32
    %48 = vector.broadcast %cst_21 : f32 to vector<8x96xf32>
    %49 = arith.addf %48, %47 : vector<8x96xf32>
    %50 = arith.divf %48, %49 : vector<8x96xf32>
    %51 = vector.extract_strided_slice %50 {offsets = [0, 0], sizes = [8, 32], strides = [1, 1]} : vector<8x96xf32> to vector<8x32xf32>
    %52 = vector.extract_strided_slice %50 {offsets = [0, 32], sizes = [8, 32], strides = [1, 1]} : vector<8x96xf32> to vector<8x32xf32>
    %53 = vector.extract_strided_slice %50 {offsets = [0, 64], sizes = [8, 32], strides = [1, 1]} : vector<8x96xf32> to vector<8x32xf32>
    %54 = vector.extract_strided_slice %44 {offsets = [0, 96], sizes = [8, 32], strides = [1, 1]} : vector<8x128xf32> to vector<8x32xf32>
    %55 = math.tanh %54 : vector<8x32xf32>
    %56 = arith.mulf %52, %15 : vector<8x32xf32>
    %57 = arith.mulf %51, %55 : vector<8x32xf32>
    %58 = arith.addf %56, %57 : vector<8x32xf32>
    %59 = math.tanh %58 : vector<8x32xf32>
    %60 = arith.mulf %53, %59 : vector<8x32xf32>
    %c1_i32 = arith.constant 1 : i32
    %c8_i32_22 = arith.constant 8 : i32
    %61 = arith.muli %c1_i32, %c8_i32_22 : i32
    %62 = tpu.assume_multiple %61, 8 : i32
    %63 = arith.index_cast %62 : i32 to index
    %c0_23 = arith.constant 0 : index
    %64 = vector.load %arg10[%63, %c0_23] : memref<64x128xf32, #tpu.memory_space<vmem>>, vector<8x128xf32>
    %65 = arith.truncf %38 : vector<8x32xf32> to vector<8x32xbf16>
    %cst_24 = arith.constant dense<0.000000e+00> : vector<8x128xf32>
    %66 = tpu.matmul %65, %9, %cst_24 {dimension_numbers = #tpu.dot_dimension_numbers<[1], [0], [0], [1], [0, 0, 1, 1], [], []>} : vector<8x32xbf16>, vector<32x128xbf16>, vector<8x128xf32> -> vector<8x128xf32>
    %67 = arith.addf %64, %66 : vector<8x128xf32>
    %68 = vector.extract_strided_slice %67 {offsets = [0, 0], sizes = [8, 96], strides = [1, 1]} : vector<8x128xf32> to vector<8x96xf32>
    %69 = arith.negf %68 : vector<8x96xf32>
    %70 = math.exp %69 : vector<8x96xf32>
    %cst_25 = arith.constant 1.000000e+00 : f32
    %71 = vector.broadcast %cst_25 : f32 to vector<8x96xf32>
    %72 = arith.addf %71, %70 : vector<8x96xf32>
    %73 = arith.divf %71, %72 : vector<8x96xf32>
    %74 = vector.extract_strided_slice %73 {offsets = [0, 0], sizes = [8, 32], strides = [1, 1]} : vector<8x96xf32> to vector<8x32xf32>
    %75 = vector.extract_strided_slice %73 {offsets = [0, 32], sizes = [8, 32], strides = [1, 1]} : vector<8x96xf32> to vector<8x32xf32>
    %76 = vector.extract_strided_slice %73 {offsets = [0, 64], sizes = [8, 32], strides = [1, 1]} : vector<8x96xf32> to vector<8x32xf32>
    %77 = vector.extract_strided_slice %67 {offsets = [0, 96], sizes = [8, 32], strides = [1, 1]} : vector<8x128xf32> to vector<8x32xf32>
    %78 = math.tanh %77 : vector<8x32xf32>
    %79 = arith.mulf %75, %36 : vector<8x32xf32>
    %80 = arith.mulf %74, %78 : vector<8x32xf32>
    %81 = arith.addf %79, %80 : vector<8x32xf32>
    %82 = math.tanh %81 : vector<8x32xf32>
    %83 = arith.mulf %76, %82 : vector<8x32xf32>
    %84 = arith.truncf %83 : vector<8x32xf32> to vector<8x32xbf16>
    %cst_26 = arith.constant dense<0.000000e+00> : vector<8x128xf32>
    %85 = tpu.matmul %84, %11, %cst_26 {dimension_numbers = #tpu.dot_dimension_numbers<[1], [0], [0], [1], [0, 0, 1, 1], [], []>} : vector<8x32xbf16>, vector<32x128xbf16>, vector<8x128xf32> -> vector<8x128xf32>
    %86 = arith.truncf %60 : vector<8x32xf32> to vector<8x32xbf16>
    %cst_27 = arith.constant dense<0.000000e+00> : vector<8x128xf32>
    %87 = tpu.matmul %86, %10, %cst_27 {dimension_numbers = #tpu.dot_dimension_numbers<[1], [0], [0], [1], [0, 0, 1, 1], [], []>} : vector<8x32xbf16>, vector<32x128xbf16>, vector<8x128xf32> -> vector<8x128xf32>
    %88 = arith.addf %85, %87 : vector<8x128xf32>
    %89 = arith.addf %88, %14 : vector<8x128xf32>
    %90 = vector.extract_strided_slice %89 {offsets = [0, 0], sizes = [8, 96], strides = [1, 1]} : vector<8x128xf32> to vector<8x96xf32>
    %91 = arith.negf %90 : vector<8x96xf32>
    %92 = math.exp %91 : vector<8x96xf32>
    %cst_28 = arith.constant 1.000000e+00 : f32
    %93 = vector.broadcast %cst_28 : f32 to vector<8x96xf32>
    %94 = arith.addf %93, %92 : vector<8x96xf32>
    %95 = arith.divf %93, %94 : vector<8x96xf32>
    %96 = vector.extract_strided_slice %95 {offsets = [0, 0], sizes = [8, 32], strides = [1, 1]} : vector<8x96xf32> to vector<8x32xf32>
    %97 = vector.extract_strided_slice %95 {offsets = [0, 32], sizes = [8, 32], strides = [1, 1]} : vector<8x96xf32> to vector<8x32xf32>
    %98 = vector.extract_strided_slice %95 {offsets = [0, 64], sizes = [8, 32], strides = [1, 1]} : vector<8x96xf32> to vector<8x32xf32>
    %99 = vector.extract_strided_slice %89 {offsets = [0, 96], sizes = [8, 32], strides = [1, 1]} : vector<8x128xf32> to vector<8x32xf32>
    %100 = math.tanh %99 : vector<8x32xf32>
    %101 = arith.mulf %97, %58 : vector<8x32xf32>
    %102 = arith.mulf %96, %100 : vector<8x32xf32>
    %103 = arith.addf %101, %102 : vector<8x32xf32>
    %104 = math.tanh %103 : vector<8x32xf32>
    %105 = arith.mulf %98, %104 : vector<8x32xf32>
    %c2_i32 = arith.constant 2 : i32
    %c8_i32_29 = arith.constant 8 : i32
    %106 = arith.muli %c2_i32, %c8_i32_29 : i32
    %107 = tpu.assume_multiple %106, 8 : i32
    %108 = arith.index_cast %107 : i32 to index
    %c0_30 = arith.constant 0 : index
    %109 = vector.load %arg10[%108, %c0_30] : memref<64x128xf32, #tpu.memory_space<vmem>>, vector<8x128xf32>
    %110 = arith.truncf %83 : vector<8x32xf32> to vector<8x32xbf16>
    %cst_31 = arith.constant dense<0.000000e+00> : vector<8x128xf32>
    %111 = tpu.matmul %110, %9, %cst_31 {dimension_numbers = #tpu.dot_dimension_numbers<[1], [0], [0], [1], [0, 0, 1, 1], [], []>} : vector<8x32xbf16>, vector<32x128xbf16>, vector<8x128xf32> -> vector<8x128xf32>
    %112 = arith.addf %109, %111 : vector<8x128xf32>
    %113 = vector.extract_strided_slice %112 {offsets = [0, 0], sizes = [8, 96], strides = [1, 1]} : vector<8x128xf32> to vector<8x96xf32>
    %114 = arith.negf %113 : vector<8x96xf32>
    %115 = math.exp %114 : vector<8x96xf32>
    %cst_32 = arith.constant 1.000000e+00 : f32
    %116 = vector.broadcast %cst_32 : f32 to vector<8x96xf32>
    %117 = arith.addf %116, %115 : vector<8x96xf32>
    %118 = arith.divf %116, %117 : vector<8x96xf32>
    %119 = vector.extract_strided_slice %118 {offsets = [0, 0], sizes = [8, 32], strides = [1, 1]} : vector<8x96xf32> to vector<8x32xf32>
    %120 = vector.extract_strided_slice %118 {offsets = [0, 32], sizes = [8, 32], strides = [1, 1]} : vector<8x96xf32> to vector<8x32xf32>
    %121 = vector.extract_strided_slice %118 {offsets = [0, 64], sizes = [8, 32], strides = [1, 1]} : vector<8x96xf32> to vector<8x32xf32>
    %122 = vector.extract_strided_slice %112 {offsets = [0, 96], sizes = [8, 32], strides = [1, 1]} : vector<8x128xf32> to vector<8x32xf32>
    %123 = math.tanh %122 : vector<8x32xf32>
    %124 = arith.mulf %120, %81 : vector<8x32xf32>
    %125 = arith.mulf %119, %123 : vector<8x32xf32>
    %126 = arith.addf %124, %125 : vector<8x32xf32>
    %127 = math.tanh %126 : vector<8x32xf32>
    %128 = arith.mulf %121, %127 : vector<8x32xf32>
    %129 = arith.truncf %128 : vector<8x32xf32> to vector<8x32xbf16>
    %cst_33 = arith.constant dense<0.000000e+00> : vector<8x128xf32>
    %130 = tpu.matmul %129, %11, %cst_33 {dimension_numbers = #tpu.dot_dimension_numbers<[1], [0], [0], [1], [0, 0, 1, 1], [], []>} : vector<8x32xbf16>, vector<32x128xbf16>, vector<8x128xf32> -> vector<8x128xf32>
    %131 = arith.truncf %105 : vector<8x32xf32> to vector<8x32xbf16>
    %cst_34 = arith.constant dense<0.000000e+00> : vector<8x128xf32>
    %132 = tpu.matmul %131, %10, %cst_34 {dimension_numbers = #tpu.dot_dimension_numbers<[1], [0], [0], [1], [0, 0, 1, 1], [], []>} : vector<8x32xbf16>, vector<32x128xbf16>, vector<8x128xf32> -> vector<8x128xf32>
    %133 = arith.addf %130, %132 : vector<8x128xf32>
    %134 = arith.addf %133, %14 : vector<8x128xf32>
    %135 = vector.extract_strided_slice %134 {offsets = [0, 0], sizes = [8, 96], strides = [1, 1]} : vector<8x128xf32> to vector<8x96xf32>
    %136 = arith.negf %135 : vector<8x96xf32>
    %137 = math.exp %136 : vector<8x96xf32>
    %cst_35 = arith.constant 1.000000e+00 : f32
    %138 = vector.broadcast %cst_35 : f32 to vector<8x96xf32>
    %139 = arith.addf %138, %137 : vector<8x96xf32>
    %140 = arith.divf %138, %139 : vector<8x96xf32>
    %141 = vector.extract_strided_slice %140 {offsets = [0, 0], sizes = [8, 32], strides = [1, 1]} : vector<8x96xf32> to vector<8x32xf32>
    %142 = vector.extract_strided_slice %140 {offsets = [0, 32], sizes = [8, 32], strides = [1, 1]} : vector<8x96xf32> to vector<8x32xf32>
    %143 = vector.extract_strided_slice %140 {offsets = [0, 64], sizes = [8, 32], strides = [1, 1]} : vector<8x96xf32> to vector<8x32xf32>
    %144 = vector.extract_strided_slice %134 {offsets = [0, 96], sizes = [8, 32], strides = [1, 1]} : vector<8x128xf32> to vector<8x32xf32>
    %145 = math.tanh %144 : vector<8x32xf32>
    %146 = arith.mulf %142, %103 : vector<8x32xf32>
    %147 = arith.mulf %141, %145 : vector<8x32xf32>
    %148 = arith.addf %146, %147 : vector<8x32xf32>
    %149 = math.tanh %148 : vector<8x32xf32>
    %150 = arith.mulf %143, %149 : vector<8x32xf32>
    %c3_i32 = arith.constant 3 : i32
    %c8_i32_36 = arith.constant 8 : i32
    %151 = arith.muli %c3_i32, %c8_i32_36 : i32
    %152 = tpu.assume_multiple %151, 8 : i32
    %153 = arith.index_cast %152 : i32 to index
    %c0_37 = arith.constant 0 : index
    %154 = vector.load %arg10[%153, %c0_37] : memref<64x128xf32, #tpu.memory_space<vmem>>, vector<8x128xf32>
    %155 = arith.truncf %128 : vector<8x32xf32> to vector<8x32xbf16>
    %cst_38 = arith.constant dense<0.000000e+00> : vector<8x128xf32>
    %156 = tpu.matmul %155, %9, %cst_38 {dimension_numbers = #tpu.dot_dimension_numbers<[1], [0], [0], [1], [0, 0, 1, 1], [], []>} : vector<8x32xbf16>, vector<32x128xbf16>, vector<8x128xf32> -> vector<8x128xf32>
    %157 = arith.addf %154, %156 : vector<8x128xf32>
    %158 = vector.extract_strided_slice %157 {offsets = [0, 0], sizes = [8, 96], strides = [1, 1]} : vector<8x128xf32> to vector<8x96xf32>
    %159 = arith.negf %158 : vector<8x96xf32>
    %160 = math.exp %159 : vector<8x96xf32>
    %cst_39 = arith.constant 1.000000e+00 : f32
    %161 = vector.broadcast %cst_39 : f32 to vector<8x96xf32>
    %162 = arith.addf %161, %160 : vector<8x96xf32>
    %163 = arith.divf %161, %162 : vector<8x96xf32>
    %164 = vector.extract_strided_slice %163 {offsets = [0, 0], sizes = [8, 32], strides = [1, 1]} : vector<8x96xf32> to vector<8x32xf32>
    %165 = vector.extract_strided_slice %163 {offsets = [0, 32], sizes = [8, 32], strides = [1, 1]} : vector<8x96xf32> to vector<8x32xf32>
    %166 = vector.extract_strided_slice %163 {offsets = [0, 64], sizes = [8, 32], strides = [1, 1]} : vector<8x96xf32> to vector<8x32xf32>
    %167 = vector.extract_strided_slice %157 {offsets = [0, 96], sizes = [8, 32], strides = [1, 1]} : vector<8x128xf32> to vector<8x32xf32>
    %168 = math.tanh %167 : vector<8x32xf32>
    %169 = arith.mulf %165, %126 : vector<8x32xf32>
    %170 = arith.mulf %164, %168 : vector<8x32xf32>
    %171 = arith.addf %169, %170 : vector<8x32xf32>
    %172 = math.tanh %171 : vector<8x32xf32>
    %173 = arith.mulf %166, %172 : vector<8x32xf32>
    %174 = arith.truncf %173 : vector<8x32xf32> to vector<8x32xbf16>
    %cst_40 = arith.constant dense<0.000000e+00> : vector<8x128xf32>
    %175 = tpu.matmul %174, %11, %cst_40 {dimension_numbers = #tpu.dot_dimension_numbers<[1], [0], [0], [1], [0, 0, 1, 1], [], []>} : vector<8x32xbf16>, vector<32x128xbf16>, vector<8x128xf32> -> vector<8x128xf32>
    %176 = arith.truncf %150 : vector<8x32xf32> to vector<8x32xbf16>
    %cst_41 = arith.constant dense<0.000000e+00> : vector<8x128xf32>
    %177 = tpu.matmul %176, %10, %cst_41 {dimension_numbers = #tpu.dot_dimension_numbers<[1], [0], [0], [1], [0, 0, 1, 1], [], []>} : vector<8x32xbf16>, vector<32x128xbf16>, vector<8x128xf32> -> vector<8x128xf32>
    %178 = arith.addf %175, %177 : vector<8x128xf32>
    %179 = arith.addf %178, %14 : vector<8x128xf32>
    %180 = vector.extract_strided_slice %179 {offsets = [0, 0], sizes = [8, 96], strides = [1, 1]} : vector<8x128xf32> to vector<8x96xf32>
    %181 = arith.negf %180 : vector<8x96xf32>
    %182 = math.exp %181 : vector<8x96xf32>
    %cst_42 = arith.constant 1.000000e+00 : f32
    %183 = vector.broadcast %cst_42 : f32 to vector<8x96xf32>
    %184 = arith.addf %183, %182 : vector<8x96xf32>
    %185 = arith.divf %183, %184 : vector<8x96xf32>
    %186 = vector.extract_strided_slice %185 {offsets = [0, 0], sizes = [8, 32], strides = [1, 1]} : vector<8x96xf32> to vector<8x32xf32>
    %187 = vector.extract_strided_slice %185 {offsets = [0, 32], sizes = [8, 32], strides = [1, 1]} : vector<8x96xf32> to vector<8x32xf32>
    %188 = vector.extract_strided_slice %185 {offsets = [0, 64], sizes = [8, 32], strides = [1, 1]} : vector<8x96xf32> to vector<8x32xf32>
    %189 = vector.extract_strided_slice %179 {offsets = [0, 96], sizes = [8, 32], strides = [1, 1]} : vector<8x128xf32> to vector<8x32xf32>
    %190 = math.tanh %189 : vector<8x32xf32>
    %191 = arith.mulf %187, %148 : vector<8x32xf32>
    %192 = arith.mulf %186, %190 : vector<8x32xf32>
    %193 = arith.addf %191, %192 : vector<8x32xf32>
    %194 = math.tanh %193 : vector<8x32xf32>
    %195 = arith.mulf %188, %194 : vector<8x32xf32>
    %c4_i32 = arith.constant 4 : i32
    %c8_i32_43 = arith.constant 8 : i32
    %196 = arith.muli %c4_i32, %c8_i32_43 : i32
    %197 = tpu.assume_multiple %196, 8 : i32
    %198 = arith.index_cast %197 : i32 to index
    %c0_44 = arith.constant 0 : index
    %199 = vector.load %arg10[%198, %c0_44] : memref<64x128xf32, #tpu.memory_space<vmem>>, vector<8x128xf32>
    %200 = arith.truncf %173 : vector<8x32xf32> to vector<8x32xbf16>
    %cst_45 = arith.constant dense<0.000000e+00> : vector<8x128xf32>
    %201 = tpu.matmul %200, %9, %cst_45 {dimension_numbers = #tpu.dot_dimension_numbers<[1], [0], [0], [1], [0, 0, 1, 1], [], []>} : vector<8x32xbf16>, vector<32x128xbf16>, vector<8x128xf32> -> vector<8x128xf32>
    %202 = arith.addf %199, %201 : vector<8x128xf32>
    %203 = vector.extract_strided_slice %202 {offsets = [0, 0], sizes = [8, 96], strides = [1, 1]} : vector<8x128xf32> to vector<8x96xf32>
    %204 = arith.negf %203 : vector<8x96xf32>
    %205 = math.exp %204 : vector<8x96xf32>
    %cst_46 = arith.constant 1.000000e+00 : f32
    %206 = vector.broadcast %cst_46 : f32 to vector<8x96xf32>
    %207 = arith.addf %206, %205 : vector<8x96xf32>
    %208 = arith.divf %206, %207 : vector<8x96xf32>
    %209 = vector.extract_strided_slice %208 {offsets = [0, 0], sizes = [8, 32], strides = [1, 1]} : vector<8x96xf32> to vector<8x32xf32>
    %210 = vector.extract_strided_slice %208 {offsets = [0, 32], sizes = [8, 32], strides = [1, 1]} : vector<8x96xf32> to vector<8x32xf32>
    %211 = vector.extract_strided_slice %208 {offsets = [0, 64], sizes = [8, 32], strides = [1, 1]} : vector<8x96xf32> to vector<8x32xf32>
    %212 = vector.extract_strided_slice %202 {offsets = [0, 96], sizes = [8, 32], strides = [1, 1]} : vector<8x128xf32> to vector<8x32xf32>
    %213 = math.tanh %212 : vector<8x32xf32>
    %214 = arith.mulf %210, %171 : vector<8x32xf32>
    %215 = arith.mulf %209, %213 : vector<8x32xf32>
    %216 = arith.addf %214, %215 : vector<8x32xf32>
    %217 = math.tanh %216 : vector<8x32xf32>
    %218 = arith.mulf %211, %217 : vector<8x32xf32>
    %219 = arith.truncf %218 : vector<8x32xf32> to vector<8x32xbf16>
    %cst_47 = arith.constant dense<0.000000e+00> : vector<8x128xf32>
    %220 = tpu.matmul %219, %11, %cst_47 {dimension_numbers = #tpu.dot_dimension_numbers<[1], [0], [0], [1], [0, 0, 1, 1], [], []>} : vector<8x32xbf16>, vector<32x128xbf16>, vector<8x128xf32> -> vector<8x128xf32>
    %221 = arith.truncf %195 : vector<8x32xf32> to vector<8x32xbf16>
    %cst_48 = arith.constant dense<0.000000e+00> : vector<8x128xf32>
    %222 = tpu.matmul %221, %10, %cst_48 {dimension_numbers = #tpu.dot_dimension_numbers<[1], [0], [0], [1], [0, 0, 1, 1], [], []>} : vector<8x32xbf16>, vector<32x128xbf16>, vector<8x128xf32> -> vector<8x128xf32>
    %223 = arith.addf %220, %222 : vector<8x128xf32>
    %224 = arith.addf %223, %14 : vector<8x128xf32>
    %225 = vector.extract_strided_slice %224 {offsets = [0, 0], sizes = [8, 96], strides = [1, 1]} : vector<8x128xf32> to vector<8x96xf32>
    %226 = arith.negf %225 : vector<8x96xf32>
    %227 = math.exp %226 : vector<8x96xf32>
    %cst_49 = arith.constant 1.000000e+00 : f32
    %228 = vector.broadcast %cst_49 : f32 to vector<8x96xf32>
    %229 = arith.addf %228, %227 : vector<8x96xf32>
    %230 = arith.divf %228, %229 : vector<8x96xf32>
    %231 = vector.extract_strided_slice %230 {offsets = [0, 0], sizes = [8, 32], strides = [1, 1]} : vector<8x96xf32> to vector<8x32xf32>
    %232 = vector.extract_strided_slice %230 {offsets = [0, 32], sizes = [8, 32], strides = [1, 1]} : vector<8x96xf32> to vector<8x32xf32>
    %233 = vector.extract_strided_slice %230 {offsets = [0, 64], sizes = [8, 32], strides = [1, 1]} : vector<8x96xf32> to vector<8x32xf32>
    %234 = vector.extract_strided_slice %224 {offsets = [0, 96], sizes = [8, 32], strides = [1, 1]} : vector<8x128xf32> to vector<8x32xf32>
    %235 = math.tanh %234 : vector<8x32xf32>
    %236 = arith.mulf %232, %193 : vector<8x32xf32>
    %237 = arith.mulf %231, %235 : vector<8x32xf32>
    %238 = arith.addf %236, %237 : vector<8x32xf32>
    %239 = math.tanh %238 : vector<8x32xf32>
    %240 = arith.mulf %233, %239 : vector<8x32xf32>
    %c5_i32 = arith.constant 5 : i32
    %c8_i32_50 = arith.constant 8 : i32
    %241 = arith.muli %c5_i32, %c8_i32_50 : i32
    %242 = tpu.assume_multiple %241, 8 : i32
    %243 = arith.index_cast %242 : i32 to index
    %c0_51 = arith.constant 0 : index
    %244 = vector.load %arg10[%243, %c0_51] : memref<64x128xf32, #tpu.memory_space<vmem>>, vector<8x128xf32>
    %245 = arith.truncf %218 : vector<8x32xf32> to vector<8x32xbf16>
    %cst_52 = arith.constant dense<0.000000e+00> : vector<8x128xf32>
    %246 = tpu.matmul %245, %9, %cst_52 {dimension_numbers = #tpu.dot_dimension_numbers<[1], [0], [0], [1], [0, 0, 1, 1], [], []>} : vector<8x32xbf16>, vector<32x128xbf16>, vector<8x128xf32> -> vector<8x128xf32>
    %247 = arith.addf %244, %246 : vector<8x128xf32>
    %248 = vector.extract_strided_slice %247 {offsets = [0, 0], sizes = [8, 96], strides = [1, 1]} : vector<8x128xf32> to vector<8x96xf32>
    %249 = arith.negf %248 : vector<8x96xf32>
    %250 = math.exp %249 : vector<8x96xf32>
    %cst_53 = arith.constant 1.000000e+00 : f32
    %251 = vector.broadcast %cst_53 : f32 to vector<8x96xf32>
    %252 = arith.addf %251, %250 : vector<8x96xf32>
    %253 = arith.divf %251, %252 : vector<8x96xf32>
    %254 = vector.extract_strided_slice %253 {offsets = [0, 0], sizes = [8, 32], strides = [1, 1]} : vector<8x96xf32> to vector<8x32xf32>
    %255 = vector.extract_strided_slice %253 {offsets = [0, 32], sizes = [8, 32], strides = [1, 1]} : vector<8x96xf32> to vector<8x32xf32>
    %256 = vector.extract_strided_slice %253 {offsets = [0, 64], sizes = [8, 32], strides = [1, 1]} : vector<8x96xf32> to vector<8x32xf32>
    %257 = vector.extract_strided_slice %247 {offsets = [0, 96], sizes = [8, 32], strides = [1, 1]} : vector<8x128xf32> to vector<8x32xf32>
    %258 = math.tanh %257 : vector<8x32xf32>
    %259 = arith.mulf %255, %216 : vector<8x32xf32>
    %260 = arith.mulf %254, %258 : vector<8x32xf32>
    %261 = arith.addf %259, %260 : vector<8x32xf32>
    %262 = math.tanh %261 : vector<8x32xf32>
    %263 = arith.mulf %256, %262 : vector<8x32xf32>
    %264 = arith.truncf %263 : vector<8x32xf32> to vector<8x32xbf16>
    %cst_54 = arith.constant dense<0.000000e+00> : vector<8x128xf32>
    %265 = tpu.matmul %264, %11, %cst_54 {dimension_numbers = #tpu.dot_dimension_numbers<[1], [0], [0], [1], [0, 0, 1, 1], [], []>} : vector<8x32xbf16>, vector<32x128xbf16>, vector<8x128xf32> -> vector<8x128xf32>
    %266 = arith.truncf %240 : vector<8x32xf32> to vector<8x32xbf16>
    %cst_55 = arith.constant dense<0.000000e+00> : vector<8x128xf32>
    %267 = tpu.matmul %266, %10, %cst_55 {dimension_numbers = #tpu.dot_dimension_numbers<[1], [0], [0], [1], [0, 0, 1, 1], [], []>} : vector<8x32xbf16>, vector<32x128xbf16>, vector<8x128xf32> -> vector<8x128xf32>
    %268 = arith.addf %265, %267 : vector<8x128xf32>
    %269 = arith.addf %268, %14 : vector<8x128xf32>
    %270 = vector.extract_strided_slice %269 {offsets = [0, 0], sizes = [8, 96], strides = [1, 1]} : vector<8x128xf32> to vector<8x96xf32>
    %271 = arith.negf %270 : vector<8x96xf32>
    %272 = math.exp %271 : vector<8x96xf32>
    %cst_56 = arith.constant 1.000000e+00 : f32
    %273 = vector.broadcast %cst_56 : f32 to vector<8x96xf32>
    %274 = arith.addf %273, %272 : vector<8x96xf32>
    %275 = arith.divf %273, %274 : vector<8x96xf32>
    %276 = vector.extract_strided_slice %275 {offsets = [0, 0], sizes = [8, 32], strides = [1, 1]} : vector<8x96xf32> to vector<8x32xf32>
    %277 = vector.extract_strided_slice %275 {offsets = [0, 32], sizes = [8, 32], strides = [1, 1]} : vector<8x96xf32> to vector<8x32xf32>
    %278 = vector.extract_strided_slice %275 {offsets = [0, 64], sizes = [8, 32], strides = [1, 1]} : vector<8x96xf32> to vector<8x32xf32>
    %279 = vector.extract_strided_slice %269 {offsets = [0, 96], sizes = [8, 32], strides = [1, 1]} : vector<8x128xf32> to vector<8x32xf32>
    %280 = math.tanh %279 : vector<8x32xf32>
    %281 = arith.mulf %277, %238 : vector<8x32xf32>
    %282 = arith.mulf %276, %280 : vector<8x32xf32>
    %283 = arith.addf %281, %282 : vector<8x32xf32>
    %284 = math.tanh %283 : vector<8x32xf32>
    %285 = arith.mulf %278, %284 : vector<8x32xf32>
    %c6_i32 = arith.constant 6 : i32
    %c8_i32_57 = arith.constant 8 : i32
    %286 = arith.muli %c6_i32, %c8_i32_57 : i32
    %287 = tpu.assume_multiple %286, 8 : i32
    %288 = arith.index_cast %287 : i32 to index
    %c0_58 = arith.constant 0 : index
    %289 = vector.load %arg10[%288, %c0_58] : memref<64x128xf32, #tpu.memory_space<vmem>>, vector<8x128xf32>
    %290 = arith.truncf %263 : vector<8x32xf32> to vector<8x32xbf16>
    %cst_59 = arith.constant dense<0.000000e+00> : vector<8x128xf32>
    %291 = tpu.matmul %290, %9, %cst_59 {dimension_numbers = #tpu.dot_dimension_numbers<[1], [0], [0], [1], [0, 0, 1, 1], [], []>} : vector<8x32xbf16>, vector<32x128xbf16>, vector<8x128xf32> -> vector<8x128xf32>
    %292 = arith.addf %289, %291 : vector<8x128xf32>
    %293 = vector.extract_strided_slice %292 {offsets = [0, 0], sizes = [8, 96], strides = [1, 1]} : vector<8x128xf32> to vector<8x96xf32>
    %294 = arith.negf %293 : vector<8x96xf32>
    %295 = math.exp %294 : vector<8x96xf32>
    %cst_60 = arith.constant 1.000000e+00 : f32
    %296 = vector.broadcast %cst_60 : f32 to vector<8x96xf32>
    %297 = arith.addf %296, %295 : vector<8x96xf32>
    %298 = arith.divf %296, %297 : vector<8x96xf32>
    %299 = vector.extract_strided_slice %298 {offsets = [0, 0], sizes = [8, 32], strides = [1, 1]} : vector<8x96xf32> to vector<8x32xf32>
    %300 = vector.extract_strided_slice %298 {offsets = [0, 32], sizes = [8, 32], strides = [1, 1]} : vector<8x96xf32> to vector<8x32xf32>
    %301 = vector.extract_strided_slice %298 {offsets = [0, 64], sizes = [8, 32], strides = [1, 1]} : vector<8x96xf32> to vector<8x32xf32>
    %302 = vector.extract_strided_slice %292 {offsets = [0, 96], sizes = [8, 32], strides = [1, 1]} : vector<8x128xf32> to vector<8x32xf32>
    %303 = math.tanh %302 : vector<8x32xf32>
    %304 = arith.mulf %300, %261 : vector<8x32xf32>
    %305 = arith.mulf %299, %303 : vector<8x32xf32>
    %306 = arith.addf %304, %305 : vector<8x32xf32>
    %307 = math.tanh %306 : vector<8x32xf32>
    %308 = arith.mulf %301, %307 : vector<8x32xf32>
    %309 = arith.truncf %308 : vector<8x32xf32> to vector<8x32xbf16>
    %cst_61 = arith.constant dense<0.000000e+00> : vector<8x128xf32>
    %310 = tpu.matmul %309, %11, %cst_61 {dimension_numbers = #tpu.dot_dimension_numbers<[1], [0], [0], [1], [0, 0, 1, 1], [], []>} : vector<8x32xbf16>, vector<32x128xbf16>, vector<8x128xf32> -> vector<8x128xf32>
    %311 = arith.truncf %285 : vector<8x32xf32> to vector<8x32xbf16>
    %cst_62 = arith.constant dense<0.000000e+00> : vector<8x128xf32>
    %312 = tpu.matmul %311, %10, %cst_62 {dimension_numbers = #tpu.dot_dimension_numbers<[1], [0], [0], [1], [0, 0, 1, 1], [], []>} : vector<8x32xbf16>, vector<32x128xbf16>, vector<8x128xf32> -> vector<8x128xf32>
    %313 = arith.addf %310, %312 : vector<8x128xf32>
    %314 = arith.addf %313, %14 : vector<8x128xf32>
    %315 = vector.extract_strided_slice %314 {offsets = [0, 0], sizes = [8, 96], strides = [1, 1]} : vector<8x128xf32> to vector<8x96xf32>
    %316 = arith.negf %315 : vector<8x96xf32>
    %317 = math.exp %316 : vector<8x96xf32>
    %cst_63 = arith.constant 1.000000e+00 : f32
    %318 = vector.broadcast %cst_63 : f32 to vector<8x96xf32>
    %319 = arith.addf %318, %317 : vector<8x96xf32>
    %320 = arith.divf %318, %319 : vector<8x96xf32>
    %321 = vector.extract_strided_slice %320 {offsets = [0, 0], sizes = [8, 32], strides = [1, 1]} : vector<8x96xf32> to vector<8x32xf32>
    %322 = vector.extract_strided_slice %320 {offsets = [0, 32], sizes = [8, 32], strides = [1, 1]} : vector<8x96xf32> to vector<8x32xf32>
    %323 = vector.extract_strided_slice %320 {offsets = [0, 64], sizes = [8, 32], strides = [1, 1]} : vector<8x96xf32> to vector<8x32xf32>
    %324 = vector.extract_strided_slice %314 {offsets = [0, 96], sizes = [8, 32], strides = [1, 1]} : vector<8x128xf32> to vector<8x32xf32>
    %325 = math.tanh %324 : vector<8x32xf32>
    %326 = arith.mulf %322, %283 : vector<8x32xf32>
    %327 = arith.mulf %321, %325 : vector<8x32xf32>
    %328 = arith.addf %326, %327 : vector<8x32xf32>
    %329 = math.tanh %328 : vector<8x32xf32>
    %330 = arith.mulf %323, %329 : vector<8x32xf32>
    %c7_i32 = arith.constant 7 : i32
    %c8_i32_64 = arith.constant 8 : i32
    %331 = arith.muli %c7_i32, %c8_i32_64 : i32
    %332 = tpu.assume_multiple %331, 8 : i32
    %333 = arith.index_cast %332 : i32 to index
    %c0_65 = arith.constant 0 : index
    %334 = vector.load %arg10[%333, %c0_65] : memref<64x128xf32, #tpu.memory_space<vmem>>, vector<8x128xf32>
    %335 = arith.truncf %308 : vector<8x32xf32> to vector<8x32xbf16>
    %cst_66 = arith.constant dense<0.000000e+00> : vector<8x128xf32>
    %336 = tpu.matmul %335, %9, %cst_66 {dimension_numbers = #tpu.dot_dimension_numbers<[1], [0], [0], [1], [0, 0, 1, 1], [], []>} : vector<8x32xbf16>, vector<32x128xbf16>, vector<8x128xf32> -> vector<8x128xf32>
    %337 = arith.addf %334, %336 : vector<8x128xf32>
    %338 = vector.extract_strided_slice %337 {offsets = [0, 0], sizes = [8, 96], strides = [1, 1]} : vector<8x128xf32> to vector<8x96xf32>
    %339 = arith.negf %338 : vector<8x96xf32>
    %340 = math.exp %339 : vector<8x96xf32>
    %cst_67 = arith.constant 1.000000e+00 : f32
    %341 = vector.broadcast %cst_67 : f32 to vector<8x96xf32>
    %342 = arith.addf %341, %340 : vector<8x96xf32>
    %343 = arith.divf %341, %342 : vector<8x96xf32>
    %344 = vector.extract_strided_slice %343 {offsets = [0, 0], sizes = [8, 32], strides = [1, 1]} : vector<8x96xf32> to vector<8x32xf32>
    %345 = vector.extract_strided_slice %343 {offsets = [0, 32], sizes = [8, 32], strides = [1, 1]} : vector<8x96xf32> to vector<8x32xf32>
    %346 = vector.extract_strided_slice %343 {offsets = [0, 64], sizes = [8, 32], strides = [1, 1]} : vector<8x96xf32> to vector<8x32xf32>
    %347 = vector.extract_strided_slice %337 {offsets = [0, 96], sizes = [8, 32], strides = [1, 1]} : vector<8x128xf32> to vector<8x32xf32>
    %348 = math.tanh %347 : vector<8x32xf32>
    %349 = arith.mulf %345, %306 : vector<8x32xf32>
    %350 = arith.mulf %344, %348 : vector<8x32xf32>
    %351 = arith.addf %349, %350 : vector<8x32xf32>
    %352 = math.tanh %351 : vector<8x32xf32>
    %353 = arith.mulf %346, %352 : vector<8x32xf32>
    %354 = arith.truncf %353 : vector<8x32xf32> to vector<8x32xbf16>
    %cst_68 = arith.constant dense<0.000000e+00> : vector<8x128xf32>
    %355 = tpu.matmul %354, %11, %cst_68 {dimension_numbers = #tpu.dot_dimension_numbers<[1], [0], [0], [1], [0, 0, 1, 1], [], []>} : vector<8x32xbf16>, vector<32x128xbf16>, vector<8x128xf32> -> vector<8x128xf32>
    %356 = arith.truncf %330 : vector<8x32xf32> to vector<8x32xbf16>
    %cst_69 = arith.constant dense<0.000000e+00> : vector<8x128xf32>
    %357 = tpu.matmul %356, %10, %cst_69 {dimension_numbers = #tpu.dot_dimension_numbers<[1], [0], [0], [1], [0, 0, 1, 1], [], []>} : vector<8x32xbf16>, vector<32x128xbf16>, vector<8x128xf32> -> vector<8x128xf32>
    %358 = arith.addf %355, %357 : vector<8x128xf32>
    %359 = arith.addf %358, %14 : vector<8x128xf32>
    %360 = vector.extract_strided_slice %359 {offsets = [0, 0], sizes = [8, 96], strides = [1, 1]} : vector<8x128xf32> to vector<8x96xf32>
    %361 = arith.negf %360 : vector<8x96xf32>
    %362 = math.exp %361 : vector<8x96xf32>
    %cst_70 = arith.constant 1.000000e+00 : f32
    %363 = vector.broadcast %cst_70 : f32 to vector<8x96xf32>
    %364 = arith.addf %363, %362 : vector<8x96xf32>
    %365 = arith.divf %363, %364 : vector<8x96xf32>
    %366 = vector.extract_strided_slice %365 {offsets = [0, 0], sizes = [8, 32], strides = [1, 1]} : vector<8x96xf32> to vector<8x32xf32>
    %367 = vector.extract_strided_slice %365 {offsets = [0, 32], sizes = [8, 32], strides = [1, 1]} : vector<8x96xf32> to vector<8x32xf32>
    %368 = vector.extract_strided_slice %365 {offsets = [0, 64], sizes = [8, 32], strides = [1, 1]} : vector<8x96xf32> to vector<8x32xf32>
    %369 = vector.extract_strided_slice %359 {offsets = [0, 96], sizes = [8, 32], strides = [1, 1]} : vector<8x128xf32> to vector<8x32xf32>
    %370 = math.tanh %369 : vector<8x32xf32>
    %371 = arith.mulf %367, %328 : vector<8x32xf32>
    %372 = arith.mulf %366, %370 : vector<8x32xf32>
    %373 = arith.addf %371, %372 : vector<8x32xf32>
    %374 = math.tanh %373 : vector<8x32xf32>
    %375 = arith.mulf %368, %374 : vector<8x32xf32>
    %c8_i32_71 = arith.constant 8 : i32
    %376 = math.tanh %353 : vector<8x32xf32>
    %377 = math.tanh %351 : vector<8x32xf32>
    %378 = math.tanh %375 : vector<8x32xf32>
    %379 = math.tanh %373 : vector<8x32xf32>
    %380 = tpu.concatenate %376, %377, %378, %379 in 1 : vector<8x32xf32>, vector<8x32xf32>, vector<8x32xf32>, vector<8x32xf32> -> vector<8x128xf32>
    %381 = arith.truncf %380 : vector<8x128xf32> to vector<8x128xbf16>
    %c0_72 = arith.constant 0 : index
    %c0_73 = arith.constant 0 : index
    %382 = vector.load %arg7[%c0_72, %c0_73] : memref<128x128xbf16, #tpu.memory_space<vmem>>, vector<128x128xbf16>
    %cst_74 = arith.constant dense<0.000000e+00> : vector<8x128xf32>
    %383 = tpu.matmul %381, %382, %cst_74 {dimension_numbers = #tpu.dot_dimension_numbers<[1], [0], [0], [1], [0, 0, 1, 1], [], []>} : vector<8x128xbf16>, vector<128x128xbf16>, vector<8x128xf32> -> vector<8x128xf32>
    %c0_75 = arith.constant 0 : index
    %c0_76 = arith.constant 0 : index
    %384 = vector.load %arg8[%c0_75, %c0_76] : memref<1x128xf32, #tpu.memory_space<vmem>>, vector<1x128xf32>
    %385 = vector.shape_cast %384 : vector<1x128xf32> to vector<1x128xf32>
    %386 = vector.broadcast %385 : vector<1x128xf32> to vector<8x128xf32>
    %387 = arith.addf %383, %386 : vector<8x128xf32>
    %c0_77 = arith.constant 0 : index
    %c0_78 = arith.constant 0 : index
    %388 = vector.load %arg9[%c0_77, %c0_78] : memref<8x128xf32, #tpu.memory_space<vmem>>, vector<8x128xf32>
    tpu.vector_store %arg9[%c0_77, %c0_78], %387 {strides = array<i32>} : memref<8x128xf32, #tpu.memory_space<vmem>>, vector<8x128xf32>,
    return
  }
}

</mosaic_0001>

<bundles_post_ra>
// kernel: tpu_custom_call.1
= control target key start
LH: loop header
LB: loop body
LE: loop exit
PB: predicated region body
PF: predicated region fallthrough
CT: control target
= control target key end

     0   :  { %14 = vsyncpa [#allocation4], 0  ;;  %s2962_s0 = inlined_call_operand.vmem [shape: f32[64,32], index: 0, kind: input, shape index: {}]   ;;  %s2963_s1 = inlined_call_operand.vmem [shape: bf16[32,128], index: 1, kind: input, shape index: {}]   ;;  %s2964_s2 = inlined_call_operand.vmem [shape: bf16[32,128], index: 2, kind: input, shape index: {}]   ;;  %s2965_s3 = inlined_call_operand.vmem [shape: f32[1,128], index: 3, kind: input, shape index: {}]   ;;  %s2966_s4 = inlined_call_operand.vmem [shape: bf16[32,128], index: 4, kind: input, shape index: {}]   ;;  %s2967_s5 = inlined_call_operand.hbm [shape: bf16[32,128], index: 5, kind: input, shape index: {}]   ;;  %s2968_s6 = inlined_call_operand.vmem [shape: f32[1,128], index: 6, kind: input, shape index: {}]   ;;  %s2969_s7 = inlined_call_operand.vmem [shape: bf16[128,128], index: 7, kind: input, shape index: {}]   ;;  %s2970_s8 = inlined_call_operand.vmem [shape: f32[1,128], index: 8, kind: input, shape index: {}]   ;;  %s2971_s9 = inlined_call_operand.hbm [shape: f32[8,128], index: 9, kind: output, shape index: {}]  }
   0x1   :  { %15 = vsyncpa [#allocation5], 0  ;;  %s2452_s30 = smov [#allocation3]   ;;  %s2404_s13 = scalar_lea.hbm %s2967_s5, 256 }
   0x2   :  { %s31_s10 = sshll.u32 %s2452_s30, 4  ;;  %p2405_p0 = scmp.ne.s32.totalorder %s2967_s5, %s2404_s13  ;;  %s32_s10 = int_to_ptr.vmem [resolvable:$true] %s31_s10 }
   0x3   :  { %p2408_p1 = scmp.lt.u32.totalorder %s2404_s13, %s2967_s5 }
   0x5   :  { %p2410_p2 = pnand %p2408_p1, %p2405_p0 }
   0x7   :  { %2413 = shalt.err (!%p2410_p2)
}
   0x8   :  { %s2414_s18 = scalar_lea.vmem %s32_s10, 256  ;;  %p2419_p4 = scmp.lt.s32.totalorder %s32_s10, %s32_s10 }
   0x9   :  { %p2415_p3 = scmp.ne.s32.totalorder %s32_s10, %s2414_s18  ;;  %p2420_p5 = scmp.lt.s32.totalorder %s2414_s18, %s2414_s18 }
   0xb   :  { %p2421_p6 = por %p2420_p5, %p2419_p4 }
   0xd   :  { %p2422_p7 = pnand %p2421_p6, %p2415_p3 }
   0xf   :  { %2425 = shalt.err (!%p2422_p7)
}
  0x10   :  { %s2453_s19 = smov 64   ;;  %s2454_s20 = smov 4  }
  0x11   :  { %37 = dma.hbm_to_vmem [thread:$0]  %s2967_s5, 256, %s32_s10, [#allocation4], %s2453_s19, %s2453_s19, %s2454_s20  }
  0x12   :  { %2448 = dma.done.wait [#allocation4], 256  }
  0x13   :  { %2449 = vsyncadd [#allocation4], 4294967040  ;;  %v2455_v0 = vmov 0.0   ;;  %vm2456_vm0 = vmmov 0   ;;  %v2237_v1 = vld [vmem:[%s2963_s1] sm:$0xff]   ;;  %v2238_v2 = vld [vmem:[%s2963_s1 + $0x8] sm:$0xff]  }
  0x14   :  { %2033 = vmatprep.subr.bf16.mxu0 %v2455_v0  ;;  %2037 = vmatprep.mubr.msk.bf16.mxu0 %vm2456_vm0, %v2455_v0  ;;  %v48_v3 = vld [vmem:[%s2962_s0] sm:$0xff]  ;;  %v49_v4 = vld [vmem:[%s2962_s0 + $0x8] sm:$0xff]  ;;  %v50_v5 = vld [vmem:[%s2962_s0 + $0x10] sm:$0xff]  ;;  %vm91_vm1 = vcmask 261120   ;;  %v2457_v25 = vmov 0   ;;  %vm1725_vm2 = vcmask 523264  }
  0x15   :  { %2005 = vmatprep.subr.bf16.mxu1 %v2237_v1  ;;  %2253 = vtanh.f32 %v48_v3  ;;  %v51_v6 = vld [vmem:[%s2962_s0 + $0x18] sm:$0xff]  ;;  %v52_v7 = vld [vmem:[%s2962_s0 + $0x20] sm:$0xff]  ;;  %v53_v8 = vld [vmem:[%s2962_s0 + $0x28] sm:$0xff]  ;;  %vm1727_vm3 = vcmask 785408  }
  0x16   :  { %2006 = vmatpush3.bf16.msra.mxu1 %v2237_v1  ;;  %2255 = vtanh.f32 %v49_v4  ;;  %v54_v9 = vld [vmem:[%s2962_s0 + $0x30] sm:$0xff]  ;;  %v55_v10 = vld [vmem:[%s2962_s0 + $0x38] sm:$0xff]  ;;  %v2561_v16 = vld [vmem:[%s2964_s2] sm:$0xff]  }
  0x17   :  { %2007 = vmatprep.subr.bf16.mxu1 %v2238_v2  ;;  %2257 = vtanh.f32 %v50_v5  ;;  %v2569_v23 = vld [vmem:[%s2964_s2 + $0x8] sm:$0xff]   ;;  %v1857_v26 = vld [vmem:[%s2965_s3] ss:$0 sm:$0xff]  ;;  %s2458_s3 = smov 32  }
  0x18   :  { %2259 = vtanh.f32 %v51_v6  ;;  %v2602_v58 = vld [vmem:[#allocation3] sm:$0xff]   ;;  %v2610_v60 = vld [vmem:[#allocation3 + $0x8] sm:$0xff]  }
  0x19   :  { %2261 = vtanh.f32 %v52_v7  ;;  %v2607_v59 = vld [vmem:[%s2966_s4] sm:$0xff]   ;;  %v2616_v61 = vld [vmem:[%s2966_s4 + $0x8] sm:$0xff]  }
  0x1a   :  { %2008 = vmatpush3.bf16.msra.mxu1 %v2238_v2  ;;  %2263 = vtanh.f32 %v53_v8  ;;  %2034 = vmatpush3.bf16.msra.mxu0 %v2607_v59  ;;  %v2649_v8 = vld [vmem:[%s2968_s6] ss:$0 sm:$0xff] }
  0x1b   :  { %2017 = vmatprep.subr.bf16.mxu1 %v2455_v0  ;;  %2265 = vtanh.f32 %v54_v9  ;;  %2035 = vmatprep.subr.bf16.mxu0 %v2455_v0 }
  0x1c   :  { %2267 = vtanh.f32 %v55_v10 }
  0x1e   :  { %2036 = vmatpush3.bf16.msra.mxu0 %v2616_v61 }
  0x1f   :  { %v2254_v11 = vpop.eup %2253  ;;  %2049 = vmatprep.subr.bf16.mxu0 %v2455_v0 }
  0x20   :  { %v2256_v12 = vpop.eup %2255 }
  0x21   :  { %v2258_v13 = vpop.eup %2257  ;;  %v64_v14 = vpack.c.bf16 %v2256_v12, %v2254_v11 }
  0x22   :  { %v2260_v15 = vpop.eup %2259 }
  0x23   :  { %v2262_v17 = vpop.eup %2261  ;;  %2009 = vmatprep.mubr.msk.bf16.mxu1 %vm91_vm1, %v64_v14  ;;  %v65_v18 = vpack.c.bf16 %v2260_v15, %v2258_v13 }
  0x24   :  { %v2264_v19 = vpop.eup %2263 }
  0x25   :  { %v2266_v20 = vpop.eup %2265  ;;  %2010 = vmatmul.mubr.msk.bf16.vlgmr.msra.gmra.mrb[0].mxu1 %vm91_vm1, %v65_v18  ;;  %v66_v21 = vpack.c.bf16 %v2264_v19, %v2262_v17 }
  0x26   :  { %v2268_v22 = vpop.eup %2267  ;;  %2018 = vmatpush3.bf16.msra.mxu1 %v2561_v16 }
  0x27   :  { %2013 = vmatprep.mubr.msk.bf16.mxu1 %vm91_vm1, %v66_v21  ;;  %2019 = vmatprep.subr.bf16.mxu1 %v2455_v0  ;;  %v67_v24 = vpack.c.bf16 %v2268_v22, %v2266_v20 }
  0x2a   :  { %2020 = vmatpush3.bf16.msra.mxu1 %v2569_v23 }
  0x2b   :  { %2025 = vmatprep.subr.bf16.mxu1 %v2455_v0 }
  0x2d   :  { %2014 = vmatmul.mubr.msk.bf16.gmra.mrb[4].mxu1 %vm91_vm1, %v67_v24 }
  0x2e   :  { %2021 = vmatprep.mubr.msk.bf16.mxu1 %vm2456_vm0, %v2455_v0 }
  0x35   :  { %2022 = vmatmul.mubr.bf16.vlgmr.msra.gmra.mrb[8].mxu1 %v2457_v25 }
  0x36   :  { %2029 = vmatprep.mubr.msk.bf16.mxu1 %vm2456_vm0, %v2455_v0  ;;  %2026 = vmatpush3.bf16.msra.mxu1 %v2602_v58 }
  0x37   :  { %2027 = vmatprep.subr.bf16.mxu1 %v2455_v0 }
  0x3a   :  { %2028 = vmatpush3.bf16.msra.mxu1 %v2610_v60 }
  0x3b   :  { %2041 = vmatprep.subr.bf16.mxu1 %v2455_v0 }
  0x3d   :  { %2030 = vmatmul.mubr.bf16.vlgmr.msra.gmra.mrb[12].mxu1 %v2457_v25 }
  0x3e   :  { %2042 = vmatpush3.bf16.msra.mxu1 %v2561_v16  ;;  %2045 = vmatprep.mubr.msk.bf16.mxu1 %vm2456_vm0, %v2455_v0 }
  0x3f   :  { %2043 = vmatprep.subr.bf16.mxu1 %v2455_v0 }
  0x42   :  { %2044 = vmatpush3.bf16.msra.mxu1 %v2569_v23 }
  0x43   :  { %2057 = vmatprep.subr.bf16.mxu1 %v2455_v0 }
  0xf8   :  { %v2011_v27 = vpop.f32.mrb[0].mxu1 }
  0xf9   :  { %v2583_v28 = vadd.f32 %v2011_v27, %v1857_v26  ;;  %v138_v29 = vpop.f32.mrb[1].mxu1 }
  0xfa   :  { %v2012_v30 = vpop.f32.mrb[2].mxu1  ;;  %v139_v42 = vadd.f32 %v1857_v26, %v138_v29 }
  0xfb   :  { %v2585_v31 = vadd.f32 %v2012_v30, %v1857_v26  ;;  %v141_v32 = vpop.f32.mrb[3].mxu1 }
  0xfc   :  { %v2587_v33 = vadd.f32 %v1857_v26, %v141_v32 }
 0x100   :  { %v2015_v34 = vpop.f32.mrb[4].mxu1 }
 0x101   :  { %v2589_v35 = vadd.f32 %v2015_v34, %v1857_v26  ;;  %v154_v36 = vpop.f32.mrb[5].mxu1 }
 0x102   :  { %v2591_v37 = vadd.f32 %v1857_v26, %v154_v36  ;;  %v2016_v38 = vpop.f32.mrb[6].mxu1 }
 0x103   :  { %v2593_v39 = vadd.f32 %v2016_v38, %v1857_v26  ;;  %v157_v40 = vpop.f32.mrb[7].mxu1 }
 0x104   :  { %v2595_v41 = vadd.f32 %v1857_v26, %v157_v40 }
 0x108   :  { %v246_v43 = vpop.f32.mrb[8].mxu1 }
 0x109   :  { %v252_v44 = vadd.f32 %v246_v43, %v139_v42  ;;  %v2023_v45 = vpop.f32.mrb[9].mxu1 }
 0x10a   :  { %v249_v46 = vpop.f32.mrb[10].mxu1 }
 0x10b   :  { %2269 = vtanh.f32 %v252_v44  ;;  %v2024_v47 = vpop.f32.mrb[11].mxu1  ;;  %v1867_v49 = vmul.f32 -1.442695, %v252_v44 }
 0x10d   :  { %2271 = vpow2.f32 %v1867_v49 }
 0x110   :  { %v324_v3 = vpop.f32.mrb[12].mxu1 }
 0x111   :  { %v2031_v4 = vpop.f32.mrb[13].mxu1 }
 0x112   :  { %v327_v5 = vpop.f32.mrb[14].mxu1 }
 0x113   :  { %v2032_v6 = vpop.f32.mrb[15].mxu1 }
 0x115   :  { %v2270_v48 = vpop.eup %2269 }
 0x116   :  { %262 = vrot.lane.b32.xlu0 %v2270_v48, %s2458_s3 }
 0x117   :  { %v2272_v50 = vpop.eup %2271 }
 0x118   :  { %v256_v51 = vadd.f32 1.0, %v2272_v50 }
 0x11a   :  { %2273 = vrcp.f32 %v256_v51 }
 0x124   :  { %v2274_v52 = vpop.eup %2273 }
 0x125   :  { %v260_v55 = vmul.f32 0.0, %v2274_v52 }
 0x188   :  { %v263_v53 = vpop.permute.xlu0 %262 }
 0x189   :  { %v265_v54 = vmul.f32 %v2274_v52, %v263_v53 }
 0x18b   :  { %267 = vrot.lane.b32.xlu0 %v265_v54, %s2458_s3 }
 0x1fd   :  { %v268_v56 = vpop.permute.xlu0 %267 }
 0x1fe   :  { %v2599_v57 = vadd.f32 %v268_v56, %v260_v55 }
 0x200   :  { %2275 = vtanh.f32 %v2599_v57 }
 0x20a   :  { %v2276_v62 = vpop.eup %2275 }
 0x20b   :  { %273 = vrot.lane.b32.xlu1 %v2276_v62, %s2458_s3 }
 0x27d   :  { %v274_v63 = vpop.permute.xlu1 %273 }
 0x27e   :  { %v276_v1 = vmul.f32 %v2274_v52, %v274_v63 }
 0x280   :  { %v277_v2 = vpack.c.bf16 %v276_v1, %v276_v1 }
 0x282   :  { %331 = vrot.lane.b32.xlu1 %v277_v2, %s2453_s19 }
 0x2f4   :  { %v332_v7 = vpop.permute.xlu1 %331 }
 0x2f5   :  { %2038 = vmatmul.mubr.msk.bf16.vlgmr.msra.gmra.mrb[0].mxu0 %vm91_vm1, %v332_v7  ;;  %2046 = vmatmul.mubr.msk.bf16.vlgmr.msra.gmra.mrb[16].mxu1 %vm91_vm1, %v332_v7 }
 0x2f6   :  { %2058 = vmatpush3.bf16.msra.mxu1 %v2607_v59  ;;  %2050 = vmatpush3.bf16.msra.mxu0 %v2602_v58 }
 0x2f7   :  { %2059 = vmatprep.subr.bf16.mxu1 %v2455_v0  ;;  %2051 = vmatprep.subr.bf16.mxu0 %v2455_v0 }
 0x2f8   :  { %2061 = vmatprep.mubr.msk.bf16.mxu1 %vm2456_vm0, %v2455_v0  ;;  %2053 = vmatprep.mubr.msk.bf16.mxu0 %vm2456_vm0, %v2455_v0 }
 0x2fa   :  { %2060 = vmatpush3.bf16.msra.mxu1 %v2616_v61  ;;  %2052 = vmatpush3.bf16.msra.mxu0 %v2610_v60 }
 0x2fb   :  { %2065 = vmatprep.subr.bf16.mxu0 %v2455_v0  ;;  %2073 = vmatprep.subr.bf16.mxu1 %v2455_v0 }
 0x3c8   :  { %v382_v9 = vpop.f32.mrb[0].mxu0  ;;  %v449_v10 = vpop.f32.mrb[16].mxu1 }
 0x3c9   :  { %v383_v11 = vadd.f32 %v382_v9, %v324_v3  ;;  %v455_v12 = vadd.f32 %v449_v10, %v2587_v33  ;;  %v2039_v13 = vpop.f32.mrb[1].mxu0  ;;  %v2047_v14 = vpop.f32.mrb[17].mxu1 }
 0x3ca   :  { %v385_v15 = vpop.f32.mrb[2].mxu0  ;;  %v452_v17 = vpop.f32.mrb[18].mxu1 }
 0x3cb   :  { %v388_v18 = vadd.f32 %v2649_v8, %v383_v11  ;;  %2277 = vtanh.f32 %v455_v12  ;;  %v2040_v19 = vpop.f32.mrb[3].mxu0  ;;  %v2048_v20 = vpop.f32.mrb[19].mxu1  ;;  %v1875_v24 = vmul.f32 -1.442695, %v455_v12 }
 0x3cd   :  { %2279 = vtanh.f32 %v388_v18  ;;  %v1873_v25 = vmul.f32 -1.442695, %v388_v18 }
 0x3ce   :  { %2281 = vpow2.f32 %v1875_v24 }
 0x3cf   :  { %2283 = vpow2.f32 %v1873_v25 }
 0x3d5   :  { %v2278_v21 = vpop.eup %2277 }
 0x3d6   :  { %465 = vrot.lane.b32.xlu1 %v2278_v21, %s2458_s3 }
 0x3d7   :  { %v2280_v22 = vpop.eup %2279 }
 0x3d8   :  { %398 = vrot.lane.b32.xlu0 %v2280_v22, %s2458_s3  ;;  %v2282_v26 = vpop.eup %2281 }
 0x3d9   :  { %v2284_v27 = vpop.eup %2283  ;;  %v459_v29 = vadd.f32 1.0, %v2282_v26 }
 0x3da   :  { %v392_v30 = vadd.f32 1.0, %v2284_v27 }
 0x3db   :  { %2285 = vrcp.f32 %v459_v29 }
 0x3dc   :  { %2287 = vrcp.f32 %v392_v30 }
 0x3e5   :  { %v2286_v32 = vpop.eup %2285 }
 0x3e6   :  { %v2288_v36 = vpop.eup %2287  ;;  %v463_v42 = vmul.f32 %v2286_v32, %v2599_v57 }
 0x3e7   :  { %v396_v45 = vmul.f32 0.0, %v2288_v36 }
 0x448   :  { %v466_v33 = vpop.permute.xlu1 %465 }
 0x449   :  { %v468_v34 = vmul.f32 %v2286_v32, %v466_v33 }
 0x44a   :  { %v399_v38 = vpop.permute.xlu0 %398 }
 0x44b   :  { %v401_v40 = vmul.f32 %v2288_v36, %v399_v38  ;;  %470 = vrot.lane.b32.xlu1 %v468_v34, %s2458_s3 }
 0x44d   :  { %403 = vrot.lane.b32.xlu0 %v401_v40, %s2458_s3 }
 0x4bd   :  { %v471_v43 = vpop.permute.xlu1 %470 }
 0x4be   :  { %v2658_v44 = vadd.f32 %v471_v43, %v463_v42 }
 0x4bf   :  { %v404_v46 = vpop.permute.xlu0 %403 }
 0x4c0   :  { %2289 = vtanh.f32 %v2658_v44  ;;  %v2661_v47 = vadd.f32 %v404_v46, %v396_v45 }
 0x4c2   :  { %2291 = vtanh.f32 %v2661_v47 }
 0x4ca   :  { %v2290_v48 = vpop.eup %2289 }
 0x4cb   :  { %476 = vrot.lane.b32.xlu1 %v2290_v48, %s2458_s3 }
 0x4cc   :  { %v2292_v49 = vpop.eup %2291 }
 0x4cd   :  { %409 = vrot.lane.b32.xlu0 %v2292_v49, %s2458_s3 }
 0x53d   :  { %v477_v50 = vpop.permute.xlu1 %476 }
 0x53e   :  { %v479_v51 = vmul.f32 %v2286_v32, %v477_v50 }
 0x53f   :  { %v410_v52 = vpop.permute.xlu0 %409 }
 0x540   :  { %v480_v53 = vpack.c.bf16 %v479_v51, %v479_v51  ;;  %v412_v54 = vmul.f32 %v2288_v36, %v410_v52 }
 0x542   :  { %v481_v55 = vpack.c.bf16 %v412_v54, %v412_v54  ;;  %529 = vrot.lane.b32.xlu1 %v480_v53, %s2453_s19 }
 0x544   :  { %483 = vrot.lane.b32.xlu0 %v481_v55, %s2453_s19 }
 0x5b4   :  { %v530_v56 = vpop.permute.xlu1 %529 }
 0x5b5   :  { %2062 = vmatmul.mubr.msk.bf16.vlgmr.msra.gmra.mrb[20].mxu1 %vm91_vm1, %v530_v56 }
 0x5b6   :  { %v484_v57 = vpop.permute.xlu0 %483  ;;  %2074 = vmatpush3.bf16.msra.mxu1 %v2602_v58  ;;  %2077 = vmatprep.mubr.msk.bf16.mxu1 %vm2456_vm0, %v2455_v0 }
 0x5b7   :  { %2054 = vmatmul.mubr.msk.bf16.vlgmr.msra.gmra.mrb[4].mxu0 %vm91_vm1, %v484_v57  ;;  %2075 = vmatprep.subr.bf16.mxu1 %v2455_v0 }
 0x5b8   :  { %2066 = vmatpush3.bf16.msra.mxu0 %v2561_v16  ;;  %2069 = vmatprep.mubr.msk.bf16.mxu0 %vm2456_vm0, %v2455_v0 }
 0x5b9   :  { %2067 = vmatprep.subr.bf16.mxu0 %v2455_v0 }
 0x5ba   :  { %2076 = vmatpush3.bf16.msra.mxu1 %v2610_v60 }
 0x5bb   :  { %2089 = vmatprep.subr.bf16.mxu1 %v2455_v0 }
 0x5bc   :  { %2068 = vmatpush3.bf16.msra.mxu0 %v2569_v23 }
 0x5bd   :  { %2081 = vmatprep.subr.bf16.mxu0 %v2455_v0 }
 0x5bf   :  { %2070 = vmatmul.mubr.msk.bf16.vlgmr.msra.gmra.mrb[8].mxu0 %vm91_vm1, %v530_v56 }
 0x5c0   :  { %2082 = vmatpush3.bf16.msra.mxu0 %v2607_v59  ;;  %2085 = vmatprep.mubr.msk.bf16.mxu0 %vm2456_vm0, %v2455_v0 }
 0x5c1   :  { %2083 = vmatprep.subr.bf16.mxu0 %v2455_v0 }
 0x5c4   :  { %2084 = vmatpush3.bf16.msra.mxu0 %v2616_v61 }
 0x5c5   :  { %2097 = vmatprep.subr.bf16.mxu0 %v2455_v0 }
 0x688   :  { %v568_v62 = vpop.f32.mrb[20].mxu1 }
 0x689   :  { %v2063_v63 = vpop.f32.mrb[21].mxu1 }
 0x68a   :  { %v522_v1 = vpop.f32.mrb[4].mxu0  ;;  %v571_v2 = vpop.f32.mrb[22].mxu1 }
 0x68b   :  { %v569_v3 = vadd.f32 %v568_v62, %v522_v1  ;;  %v2055_v4 = vpop.f32.mrb[5].mxu0  ;;  %v2064_v5 = vpop.f32.mrb[23].mxu1 }
 0x68c   :  { %v525_v6 = vpop.f32.mrb[6].mxu0 }
 0x68d   :  { %v574_v7 = vadd.f32 %v2649_v8, %v569_v3  ;;  %v2056_v9 = vpop.f32.mrb[7].mxu0 }
 0x68f   :  { %2293 = vtanh.f32 %v574_v7  ;;  %v1878_v18 = vmul.f32 -1.442695, %v574_v7 }
 0x692   :  { %v635_v10 = vpop.f32.mrb[8].mxu0 }
 0x693   :  { %v641_v11 = vadd.f32 %v635_v10, %v2583_v28  ;;  %v2071_v12 = vpop.f32.mrb[9].mxu0 }
 0x694   :  { %v638_v13 = vpop.f32.mrb[10].mxu0 }
 0x695   :  { %2295 = vtanh.f32 %v641_v11  ;;  %v2072_v14 = vpop.f32.mrb[11].mxu0  ;;  %v1880_v19 = vmul.f32 -1.442695, %v641_v11 }
 0x696   :  { %2297 = vpow2.f32 %v1878_v18 }
 0x697   :  { %2299 = vpow2.f32 %v1880_v19 }
 0x699   :  { %v2294_v15 = vpop.eup %2293 }
 0x69a   :  { %584 = vrot.lane.b32.xlu0 %v2294_v15, %s2458_s3 }
 0x69f   :  { %v2296_v17 = vpop.eup %2295 }
 0x6a0   :  { %651 = vrot.lane.b32.xlu1 %v2296_v17, %s2458_s3  ;;  %v2298_v20 = vpop.eup %2297 }
 0x6a1   :  { %v578_v21 = vadd.f32 1.0, %v2298_v20  ;;  %v2300_v22 = vpop.eup %2299 }
 0x6a2   :  { %v645_v24 = vadd.f32 1.0, %v2300_v22 }
 0x6a3   :  { %2301 = vrcp.f32 %v578_v21 }
 0x6a4   :  { %2303 = vrcp.f32 %v645_v24 }
 0x6ad   :  { %v2302_v28 = vpop.eup %2301 }
 0x6ae   :  { %v2304_v27 = vpop.eup %2303  ;;  %v582_v32 = vmul.f32 %v2302_v28, %v2661_v47 }
 0x6af   :  { %v649_v36 = vmul.f32 %v2304_v27, %v2658_v44 }
 0x70c   :  { %v585_v25 = vpop.permute.xlu0 %584 }
 0x70d   :  { %v587_v26 = vmul.f32 %v2302_v28, %v585_v25 }
 0x70f   :  { %589 = vrot.lane.b32.xlu0 %v587_v26, %s2458_s3 }
 0x712   :  { %v652_v29 = vpop.permute.xlu1 %651 }
 0x713   :  { %v654_v30 = vmul.f32 %v2304_v27, %v652_v29 }
 0x715   :  { %656 = vrot.lane.b32.xlu1 %v654_v30, %s2458_s3 }
 0x781   :  { %v590_v33 = vpop.permute.xlu0 %589 }
 0x782   :  { %v2696_v34 = vadd.f32 %v590_v33, %v582_v32 }
 0x784   :  { %2305 = vtanh.f32 %v2696_v34 }
 0x787   :  { %v657_v38 = vpop.permute.xlu1 %656 }
 0x788   :  { %v2700_v40 = vadd.f32 %v657_v38, %v649_v36 }
 0x78a   :  { %2307 = vtanh.f32 %v2700_v40 }
 0x78e   :  { %v2306_v42 = vpop.eup %2305 }
 0x78f   :  { %595 = vrot.lane.b32.xlu0 %v2306_v42, %s2458_s3 }
 0x794   :  { %v2308_v43 = vpop.eup %2307 }
 0x795   :  { %662 = vrot.lane.b32.xlu1 %v2308_v43, %s2458_s3 }
 0x801   :  { %v596_v45 = vpop.permute.xlu0 %595 }
 0x802   :  { %v598_v46 = vmul.f32 %v2302_v28, %v596_v45 }
 0x804   :  { %v667_v47 = vpack.c.bf16 %v598_v46, %v598_v46 }
 0x806   :  { %669 = vrot.lane.b32.xlu0 %v667_v47, %s2453_s19 }
 0x807   :  { %v663_v48 = vpop.permute.xlu1 %662 }
 0x808   :  { %v665_v49 = vmul.f32 %v2304_v27, %v663_v48 }
 0x80a   :  { %v666_v50 = vpack.c.bf16 %v665_v49, %v665_v49 }
 0x80c   :  { %715 = vrot.lane.b32.xlu1 %v666_v50, %s2453_s19 }
 0x878   :  { %v670_v44 = vpop.permute.xlu0 %669 }
 0x879   :  { %2078 = vmatmul.mubr.msk.bf16.vlgmr.msra.gmra.mrb[24].mxu1 %vm91_vm1, %v670_v44 }
 0x87a   :  { %2090 = vmatpush3.bf16.msra.mxu1 %v2561_v16  ;;  %2093 = vmatprep.mubr.msk.bf16.mxu1 %vm2456_vm0, %v2455_v0 }
 0x87b   :  { %2091 = vmatprep.subr.bf16.mxu1 %v2455_v0 }
 0x87e   :  { %2092 = vmatpush3.bf16.msra.mxu1 %v2569_v23  ;;  %v716_v51 = vpop.permute.xlu1 %715 }
 0x87f   :  { %2086 = vmatmul.mubr.msk.bf16.vlgmr.msra.gmra.mrb[12].mxu0 %vm91_vm1, %v716_v51  ;;  %2105 = vmatprep.subr.bf16.mxu1 %v2455_v0 }
 0x880   :  { %2098 = vmatpush3.bf16.msra.mxu0 %v2602_v58  ;;  %2101 = vmatprep.mubr.msk.bf16.mxu0 %vm2456_vm0, %v2455_v0 }
 0x881   :  { %2094 = vmatmul.mubr.msk.bf16.vlgmr.msra.gmra.mrb[28].mxu1 %vm91_vm1, %v716_v51  ;;  %2099 = vmatprep.subr.bf16.mxu0 %v2455_v0 }
 0x882   :  { %2106 = vmatpush3.bf16.msra.mxu1 %v2607_v59  ;;  %2109 = vmatprep.mubr.msk.bf16.mxu1 %vm2456_vm0, %v2455_v0 }
 0x883   :  { %2107 = vmatprep.subr.bf16.mxu1 %v2455_v0 }
 0x884   :  { %2100 = vmatpush3.bf16.msra.mxu0 %v2610_v60 }
 0x885   :  { %2113 = vmatprep.subr.bf16.mxu0 %v2455_v0 }
 0x886   :  { %2108 = vmatpush3.bf16.msra.mxu1 %v2616_v61 }
 0x887   :  { %2121 = vmatprep.subr.bf16.mxu1 %v2455_v0 }
 0x94c   :  { %v708_v52 = vpop.f32.mrb[24].mxu1 }
 0x94d   :  { %v2079_v53 = vpop.f32.mrb[25].mxu1 }
 0x94e   :  { %v711_v54 = vpop.f32.mrb[26].mxu1 }
 0x94f   :  { %v2080_v55 = vpop.f32.mrb[27].mxu1 }
 0x952   :  { %v754_v56 = vpop.f32.mrb[12].mxu0 }
 0x953   :  { %v755_v57 = vadd.f32 %v754_v56, %v708_v52  ;;  %v2087_v62 = vpop.f32.mrb[13].mxu0 }
 0x954   :  { %v757_v63 = vpop.f32.mrb[14].mxu0  ;;  %v821_v1 = vpop.f32.mrb[28].mxu1 }
 0x955   :  { %v760_v2 = vadd.f32 %v2649_v8, %v755_v57  ;;  %v827_v3 = vadd.f32 %v821_v1, %v2585_v31  ;;  %v2088_v4 = vpop.f32.mrb[15].mxu0  ;;  %v2095_v5 = vpop.f32.mrb[29].mxu1 }
 0x956   :  { %v824_v6 = vpop.f32.mrb[30].mxu1 }
 0x957   :  { %2309 = vtanh.f32 %v760_v2  ;;  %v2096_v7 = vpop.f32.mrb[31].mxu1  ;;  %v1883_v11 = vmul.f32 -1.442695, %v760_v2  ;;  %v1885_v12 = vmul.f32 -1.442695, %v827_v3 }
 0x958   :  { %2311 = vtanh.f32 %v827_v3 }
 0x959   :  { %2313 = vpow2.f32 %v1883_v11 }
 0x95a   :  { %2315 = vpow2.f32 %v1885_v12 }
 0x961   :  { %v2310_v9 = vpop.eup %2309 }
 0x962   :  { %v2312_v10 = vpop.eup %2311  ;;  %770 = vrot.lane.b32.xlu0 %v2310_v9, %s2458_s3 }
 0x963   :  { %837 = vrot.lane.b32.xlu1 %v2312_v10, %s2458_s3  ;;  %v2314_v13 = vpop.eup %2313 }
 0x964   :  { %v2316_v14 = vpop.eup %2315  ;;  %v764_v15 = vadd.f32 1.0, %v2314_v13 }
 0x965   :  { %v831_v31 = vadd.f32 1.0, %v2316_v14 }
 0x966   :  { %2317 = vrcp.f32 %v764_v15 }
 0x967   :  { %2319 = vrcp.f32 %v831_v31 }
 0x970   :  { %v2318_v17 = vpop.eup %2317 }
 0x971   :  { %v2320_v19 = vpop.eup %2319  ;;  %v768_v24 = vmul.f32 %v2318_v17, %v2696_v34 }
 0x972   :  { %v835_v28 = vmul.f32 %v2320_v19, %v2700_v40 }
 0x9d4   :  { %v771_v18 = vpop.permute.xlu0 %770 }
 0x9d5   :  { %v838_v20 = vpop.permute.xlu1 %837  ;;  %v773_v21 = vmul.f32 %v2318_v17, %v771_v18 }
 0x9d6   :  { %v840_v22 = vmul.f32 %v2320_v19, %v838_v20 }
 0x9d7   :  { %775 = vrot.lane.b32.xlu0 %v773_v21, %s2458_s3 }
 0x9d8   :  { %842 = vrot.lane.b32.xlu1 %v840_v22, %s2458_s3 }
 0xa49   :  { %v776_v25 = vpop.permute.xlu0 %775 }
 0xa4a   :  { %v843_v26 = vpop.permute.xlu1 %842  ;;  %v2736_v27 = vadd.f32 %v776_v25, %v768_v24 }
 0xa4b   :  { %v2738_v29 = vadd.f32 %v843_v26, %v835_v28 }
 0xa4c   :  { %2321 = vtanh.f32 %v2736_v27 }
 0xa4d   :  { %2323 = vtanh.f32 %v2738_v29 }
 0xa56   :  { %v2322_v30 = vpop.eup %2321 }
 0xa57   :  { %v2324_v32 = vpop.eup %2323  ;;  %781 = vrot.lane.b32.xlu0 %v2322_v30, %s2458_s3 }
 0xa58   :  { %848 = vrot.lane.b32.xlu1 %v2324_v32, %s2458_s3 }
 0xac9   :  { %v782_v33 = vpop.permute.xlu0 %781 }
 0xaca   :  { %v849_v34 = vpop.permute.xlu1 %848  ;;  %v784_v36 = vmul.f32 %v2318_v17, %v782_v33 }
 0xacb   :  { %v851_v38 = vmul.f32 %v2320_v19, %v849_v34 }
 0xacc   :  { %v853_v40 = vpack.c.bf16 %v784_v36, %v784_v36 }
 0xacd   :  { %v852_v42 = vpack.c.bf16 %v851_v38, %v851_v38 }
 0xace   :  { %855 = vrot.lane.b32.xlu0 %v853_v40, %s2453_s19 }
 0xacf   :  { %901 = vrot.lane.b32.xlu1 %v852_v42, %s2453_s19 }
 0xb40   :  { %v856_v43 = vpop.permute.xlu0 %855 }
 0xb41   :  { %v902_v45 = vpop.permute.xlu1 %901  ;;  %2102 = vmatmul.mubr.msk.bf16.vlgmr.msra.gmra.mrb[16].mxu0 %vm91_vm1, %v856_v43 }
 0xb42   :  { %2110 = vmatmul.mubr.msk.bf16.vlgmr.msra.gmra.mrb[32].mxu1 %vm91_vm1, %v902_v45  ;;  %2114 = vmatpush3.bf16.msra.mxu0 %v2561_v16 }
 0xb43   :  { %2115 = vmatprep.subr.bf16.mxu0 %v2455_v0  ;;  %2117 = vmatprep.mubr.msk.bf16.mxu0 %vm2456_vm0, %v2455_v0 }
 0xb44   :  { %2122 = vmatpush3.bf16.msra.mxu1 %v2602_v58  ;;  %2125 = vmatprep.mubr.msk.bf16.mxu1 %vm2456_vm0, %v2455_v0 }
 0xb45   :  { %2123 = vmatprep.subr.bf16.mxu1 %v2455_v0 }
 0xb46   :  { %2116 = vmatpush3.bf16.msra.mxu0 %v2569_v23 }
 0xb47   :  { %2129 = vmatprep.subr.bf16.mxu0 %v2455_v0 }
 0xb48   :  { %2124 = vmatpush3.bf16.msra.mxu1 %v2610_v60 }
 0xb49   :  { %2118 = vmatmul.mubr.msk.bf16.vlgmr.msra.gmra.mrb[20].mxu0 %vm91_vm1, %v902_v45  ;;  %2137 = vmatprep.subr.bf16.mxu1 %v2455_v0 }
 0xb4a   :  { %2130 = vmatpush3.bf16.msra.mxu0 %v2607_v59  ;;  %2133 = vmatprep.mubr.msk.bf16.mxu0 %vm2456_vm0, %v2455_v0 }
 0xb4b   :  { %2131 = vmatprep.subr.bf16.mxu0 %v2455_v0 }
 0xb4e   :  { %2132 = vmatpush3.bf16.msra.mxu0 %v2616_v61 }
 0xb4f   :  { %2145 = vmatprep.subr.bf16.mxu0 %v2455_v0 }
 0xc14   :  { %v894_v46 = vpop.f32.mrb[16].mxu0 }
 0xc15   :  { %v940_v47 = vpop.f32.mrb[32].mxu1  ;;  %v2103_v48 = vpop.f32.mrb[17].mxu0 }
 0xc16   :  { %v941_v49 = vadd.f32 %v940_v47, %v894_v46  ;;  %v2111_v50 = vpop.f32.mrb[33].mxu1  ;;  %v897_v44 = vpop.f32.mrb[18].mxu0 }
 0xc17   :  { %v943_v51 = vpop.f32.mrb[34].mxu1  ;;  %v2104_v52 = vpop.f32.mrb[19].mxu0 }
 0xc18   :  { %v946_v53 = vadd.f32 %v2649_v8, %v941_v49  ;;  %v2112_v54 = vpop.f32.mrb[35].mxu1 }
 0xc1a   :  { %2325 = vtanh.f32 %v946_v53  ;;  %v1888_v3 = vmul.f32 -1.442695, %v946_v53 }
 0xc1c   :  { %v1007_v55 = vpop.f32.mrb[20].mxu0 }
 0xc1d   :  { %v1013_v56 = vadd.f32 %v1007_v55, %v2591_v37  ;;  %v2119_v57 = vpop.f32.mrb[21].mxu0 }
 0xc1e   :  { %v1010_v62 = vpop.f32.mrb[22].mxu0 }
 0xc1f   :  { %2327 = vtanh.f32 %v1013_v56  ;;  %v2120_v63 = vpop.f32.mrb[23].mxu0  ;;  %v1890_v4 = vmul.f32 -1.442695, %v1013_v56 }
 0xc20   :  { %2329 = vpow2.f32 %v1888_v3 }
 0xc21   :  { %2331 = vpow2.f32 %v1890_v4 }
 0xc24   :  { %v2326_v1 = vpop.eup %2325 }
 0xc25   :  { %956 = vrot.lane.b32.xlu0 %v2326_v1, %s2458_s3 }
 0xc29   :  { %v2328_v2 = vpop.eup %2327 }
 0xc2a   :  { %1023 = vrot.lane.b32.xlu1 %v2328_v2, %s2458_s3  ;;  %v2330_v5 = vpop.eup %2329 }
 0xc2b   :  { %v950_v6 = vadd.f32 1.0, %v2330_v5  ;;  %v2332_v7 = vpop.eup %2331 }
 0xc2c   :  { %v1017_v9 = vadd.f32 1.0, %v2332_v7 }
 0xc2d   :  { %2333 = vrcp.f32 %v950_v6 }
 0xc2e   :  { %2335 = vrcp.f32 %v1017_v9 }
 0xc37   :  { %v2334_v37 = vpop.eup %2333 }
 0xc38   :  { %v2336_v12 = vpop.eup %2335  ;;  %v954_v15 = vmul.f32 %v2334_v37, %v2736_v27 }
 0xc39   :  { %v1021_v18 = vmul.f32 %v2336_v12, %v2738_v29 }
 0xc97   :  { %v957_v10 = vpop.permute.xlu0 %956 }
 0xc98   :  { %v959_v11 = vmul.f32 %v2334_v37, %v957_v10 }
 0xc9a   :  { %961 = vrot.lane.b32.xlu0 %v959_v11, %s2458_s3 }
 0xc9c   :  { %v1024_v13 = vpop.permute.xlu1 %1023 }
 0xc9d   :  { %v1026_v14 = vmul.f32 %v2336_v12, %v1024_v13 }
 0xc9f   :  { %1028 = vrot.lane.b32.xlu1 %v1026_v14, %s2458_s3 }
 0xd0c   :  { %v962_v31 = vpop.permute.xlu0 %961 }
 0xd0d   :  { %v2774_v17 = vadd.f32 %v962_v31, %v954_v15 }
 0xd0f   :  { %2337 = vtanh.f32 %v2774_v17 }
 0xd11   :  { %v1029_v19 = vpop.permute.xlu1 %1028 }
 0xd12   :  { %v2778_v20 = vadd.f32 %v1029_v19, %v1021_v18 }
 0xd14   :  { %2339 = vtanh.f32 %v2778_v20 }
 0xd19   :  { %v2338_v21 = vpop.eup %2337 }
 0xd1a   :  { %967 = vrot.lane.b32.xlu0 %v2338_v21, %s2458_s3 }
 0xd1e   :  { %v2340_v22 = vpop.eup %2339 }
 0xd1f   :  { %1034 = vrot.lane.b32.xlu1 %v2340_v22, %s2458_s3 }
 0xd8c   :  { %v968_v24 = vpop.permute.xlu0 %967 }
 0xd8d   :  { %v970_v28 = vmul.f32 %v2334_v37, %v968_v24 }
 0xd8f   :  { %v1039_v25 = vpack.c.bf16 %v970_v28, %v970_v28 }
 0xd91   :  { %1041 = vrot.lane.b32.xlu0 %v1039_v25, %s2453_s19  ;;  %v1035_v26 = vpop.permute.xlu1 %1034 }
 0xd92   :  { %v1037_v27 = vmul.f32 %v2336_v12, %v1035_v26 }
 0xd94   :  { %v1038_v30 = vpack.c.bf16 %v1037_v27, %v1037_v27 }
 0xd96   :  { %1087 = vrot.lane.b32.xlu1 %v1038_v30, %s2453_s19 }
 0xe03   :  { %v1042_v29 = vpop.permute.xlu0 %1041 }
 0xe04   :  { %2126 = vmatmul.mubr.msk.bf16.vlgmr.msra.gmra.mrb[36].mxu1 %vm91_vm1, %v1042_v29 }
 0xe05   :  { %2138 = vmatpush3.bf16.msra.mxu1 %v2561_v16  ;;  %2141 = vmatprep.mubr.msk.bf16.mxu1 %vm2456_vm0, %v2455_v0 }
 0xe06   :  { %2139 = vmatprep.subr.bf16.mxu1 %v2455_v0 }
 0xe08   :  { %v1088_v32 = vpop.permute.xlu1 %1087 }
 0xe09   :  { %2140 = vmatpush3.bf16.msra.mxu1 %v2569_v23  ;;  %2134 = vmatmul.mubr.msk.bf16.vlgmr.msra.gmra.mrb[24].mxu0 %vm91_vm1, %v1088_v32 }
 0xe0a   :  { %2153 = vmatprep.subr.bf16.mxu1 %v2455_v0  ;;  %2146 = vmatpush3.bf16.msra.mxu0 %v2602_v58 }
 0xe0b   :  { %2147 = vmatprep.subr.bf16.mxu0 %v2455_v0  ;;  %2149 = vmatprep.mubr.msk.bf16.mxu0 %vm2456_vm0, %v2455_v0 }
 0xe0c   :  { %2142 = vmatmul.mubr.msk.bf16.vlgmr.msra.gmra.mrb[40].mxu1 %vm91_vm1, %v1088_v32 }
 0xe0d   :  { %2154 = vmatpush3.bf16.msra.mxu1 %v2607_v59  ;;  %2157 = vmatprep.mubr.msk.bf16.mxu1 %vm2456_vm0, %v2455_v0 }
 0xe0e   :  { %2155 = vmatprep.subr.bf16.mxu1 %v2455_v0  ;;  %2148 = vmatpush3.bf16.msra.mxu0 %v2610_v60 }
 0xe0f   :  { %2161 = vmatprep.subr.bf16.mxu0 %v2455_v0 }
 0xe11   :  { %2156 = vmatpush3.bf16.msra.mxu1 %v2616_v61 }
 0xe12   :  { %2169 = vmatprep.subr.bf16.mxu1 %v2455_v0 }
 0xed7   :  { %v1080_v33 = vpop.f32.mrb[36].mxu1 }
 0xed8   :  { %v2127_v34 = vpop.f32.mrb[37].mxu1 }
 0xed9   :  { %v1083_v36 = vpop.f32.mrb[38].mxu1 }
 0xeda   :  { %v2128_v38 = vpop.f32.mrb[39].mxu1 }
 0xedc   :  { %v1126_v40 = vpop.f32.mrb[24].mxu0 }
 0xedd   :  { %v1127_v42 = vadd.f32 %v1126_v40, %v1080_v33  ;;  %v2135_v43 = vpop.f32.mrb[25].mxu0 }
 0xede   :  { %v1129_v45 = vpop.f32.mrb[26].mxu0 }
 0xedf   :  { %v1132_v46 = vadd.f32 %v2649_v8, %v1127_v42  ;;  %v1193_v47 = vpop.f32.mrb[40].mxu1  ;;  %v2136_v48 = vpop.f32.mrb[27].mxu0 }
 0xee0   :  { %v1199_v49 = vadd.f32 %v1193_v47, %v2595_v41  ;;  %v2143_v50 = vpop.f32.mrb[41].mxu1 }
 0xee1   :  { %2341 = vtanh.f32 %v1132_v46  ;;  %v1196_v44 = vpop.f32.mrb[42].mxu1  ;;  %v1893_v54 = vmul.f32 -1.442695, %v1132_v46 }
 0xee2   :  { %2343 = vtanh.f32 %v1199_v49  ;;  %v2144_v51 = vpop.f32.mrb[43].mxu1  ;;  %v1895_v55 = vmul.f32 -1.442695, %v1199_v49 }
 0xee3   :  { %2345 = vpow2.f32 %v1893_v54 }
 0xee4   :  { %2347 = vpow2.f32 %v1895_v55 }
 0xeeb   :  { %v2342_v52 = vpop.eup %2341 }
 0xeec   :  { %v2344_v53 = vpop.eup %2343  ;;  %1142 = vrot.lane.b32.xlu0 %v2342_v52, %s2458_s3 }
 0xeed   :  { %1209 = vrot.lane.b32.xlu1 %v2344_v53, %s2458_s3  ;;  %v2346_v56 = vpop.eup %2345 }
 0xeee   :  { %v2348_v57 = vpop.eup %2347  ;;  %v1136_v62 = vadd.f32 1.0, %v2346_v56 }
 0xeef   :  { %v1203_v63 = vadd.f32 1.0, %v2348_v57 }
 0xef0   :  { %2349 = vrcp.f32 %v1136_v62 }
 0xef1   :  { %2351 = vrcp.f32 %v1203_v63 }
 0xefa   :  { %v2350_v41 = vpop.eup %2349 }
 0xefb   :  { %v2352_v2 = vpop.eup %2351  ;;  %v1140_v6 = vmul.f32 %v2350_v41, %v2774_v17 }
 0xefc   :  { %v1207_v7 = vmul.f32 %v2352_v2, %v2778_v20 }
 0xf5e   :  { %v1143_v1 = vpop.permute.xlu0 %1142 }
 0xf5f   :  { %v1210_v3 = vpop.permute.xlu1 %1209  ;;  %v1145_v4 = vmul.f32 %v2350_v41, %v1143_v1 }
 0xf60   :  { %v1212_v5 = vmul.f32 %v2352_v2, %v1210_v3 }
 0xf61   :  { %1147 = vrot.lane.b32.xlu0 %v1145_v4, %s2458_s3 }
 0xf62   :  { %1214 = vrot.lane.b32.xlu1 %v1212_v5, %s2458_s3 }
 0xfd3   :  { %v1148_v9 = vpop.permute.xlu0 %1147 }
 0xfd4   :  { %v1215_v37 = vpop.permute.xlu1 %1214  ;;  %v2814_v10 = vadd.f32 %v1148_v9, %v1140_v6 }
 0xfd5   :  { %v2816_v11 = vadd.f32 %v1215_v37, %v1207_v7  ;;  %v2401_v37 = vld [vmem:[%s2964_s2] sm:$0xff]  }
 0xfd6   :  { %2353 = vtanh.f32 %v2814_v10 }
 0xfd7   :  { %2355 = vtanh.f32 %v2816_v11 }
 0xfe0   :  { %v2354_v12 = vpop.eup %2353 }
 0xfe1   :  { %v2356_v13 = vpop.eup %2355  ;;  %1153 = vrot.lane.b32.xlu0 %v2354_v12, %s2458_s3 }
 0xfe2   :  { %1220 = vrot.lane.b32.xlu1 %v2356_v13, %s2458_s3 }
0x1053   :  { %v1154_v14 = vpop.permute.xlu0 %1153 }
0x1054   :  { %v1221_v15 = vpop.permute.xlu1 %1220  ;;  %v1156_v31 = vmul.f32 %v2350_v41, %v1154_v14 }
0x1055   :  { %v1223_v17 = vmul.f32 %v2352_v2, %v1221_v15 }
0x1056   :  { %v1225_v18 = vpack.c.bf16 %v1156_v31, %v1156_v31 }
0x1057   :  { %v1224_v19 = vpack.c.bf16 %v1223_v17, %v1223_v17 }
0x1058   :  { %1227 = vrot.lane.b32.xlu0 %v1225_v18, %s2453_s19 }
0x1059   :  { %1273 = vrot.lane.b32.xlu1 %v1224_v19, %s2453_s19 }
0x10ca   :  { %v1228_v20 = vpop.permute.xlu0 %1227 }
0x10cb   :  { %v1274_v21 = vpop.permute.xlu1 %1273  ;;  %2150 = vmatmul.mubr.msk.bf16.vlgmr.msra.gmra.mrb[28].mxu0 %vm91_vm1, %v1228_v20 }
0x10cc   :  { %2158 = vmatmul.mubr.msk.bf16.vlgmr.msra.gmra.mrb[44].mxu1 %vm91_vm1, %v1274_v21  ;;  %2162 = vmatpush3.bf16.msra.mxu0 %v2561_v16 }
0x10cd   :  { %2163 = vmatprep.subr.bf16.mxu0 %v2455_v0  ;;  %2165 = vmatprep.mubr.msk.bf16.mxu0 %vm2456_vm0, %v2455_v0 }
0x10ce   :  { %2170 = vmatpush3.bf16.msra.mxu1 %v2602_v58  ;;  %2173 = vmatprep.mubr.msk.bf16.mxu1 %vm2456_vm0, %v2455_v0 }
0x10cf   :  { %2171 = vmatprep.subr.bf16.mxu1 %v2455_v0 }
0x10d0   :  { %2164 = vmatpush3.bf16.msra.mxu0 %v2569_v23 }
0x10d1   :  { %2177 = vmatprep.subr.bf16.mxu0 %v2455_v0 }
0x10d2   :  { %2172 = vmatpush3.bf16.msra.mxu1 %v2610_v60 }
0x10d3   :  { %2166 = vmatmul.mubr.msk.bf16.vlgmr.msra.gmra.mrb[32].mxu0 %vm91_vm1, %v1274_v21  ;;  %2185 = vmatprep.subr.bf16.mxu1 %v2455_v0 }
0x10d4   :  { %2178 = vmatpush3.bf16.msra.mxu0 %v2607_v59  ;;  %2181 = vmatprep.mubr.msk.bf16.mxu0 %vm2456_vm0, %v2455_v0 }
0x10d5   :  { %2179 = vmatprep.subr.bf16.mxu0 %v2455_v0 }
0x10d8   :  { %2180 = vmatpush3.bf16.msra.mxu0 %v2616_v61 }
0x10d9   :  { %2193 = vmatprep.subr.bf16.mxu0 %v2455_v0 }
0x119e   :  { %v1266_v16 = vpop.f32.mrb[28].mxu0 }
0x119f   :  { %v1312_v23 = vpop.f32.mrb[44].mxu1  ;;  %v2151_v22 = vpop.f32.mrb[29].mxu0 }
0x11a0   :  { %v1313_v24 = vadd.f32 %v1312_v23, %v1266_v16  ;;  %v2159_v28 = vpop.f32.mrb[45].mxu1  ;;  %v1269_v25 = vpop.f32.mrb[30].mxu0 }
0x11a1   :  { %v1315_v26 = vpop.f32.mrb[46].mxu1  ;;  %v2152_v27 = vpop.f32.mrb[31].mxu0 }
0x11a2   :  { %v1318_v30 = vadd.f32 %v2649_v8, %v1313_v24  ;;  %v2160_v29 = vpop.f32.mrb[47].mxu1 }
0x11a4   :  { %2357 = vtanh.f32 %v1318_v30  ;;  %v1898_v43 = vmul.f32 -1.442695, %v1318_v30 }
0x11a6   :  { %v1379_v32 = vpop.f32.mrb[32].mxu0 }
0x11a7   :  { %v1385_v33 = vadd.f32 %v1379_v32, %v2589_v35  ;;  %v2167_v34 = vpop.f32.mrb[33].mxu0 }
0x11a8   :  { %v1382_v36 = vpop.f32.mrb[34].mxu0 }
0x11a9   :  { %2359 = vtanh.f32 %v1385_v33  ;;  %v2168_v38 = vpop.f32.mrb[35].mxu0  ;;  %v1900_v45 = vmul.f32 -1.442695, %v1385_v33 }
0x11aa   :  { %2361 = vpow2.f32 %v1898_v43 }
0x11ab   :  { %2363 = vpow2.f32 %v1900_v45 }
0x11ae   :  { %v2358_v40 = vpop.eup %2357 }
0x11af   :  { %1328 = vrot.lane.b32.xlu0 %v2358_v40, %s2458_s3 }
0x11b3   :  { %v2360_v42 = vpop.eup %2359 }
0x11b4   :  { %1395 = vrot.lane.b32.xlu1 %v2360_v42, %s2458_s3  ;;  %v2362_v46 = vpop.eup %2361 }
0x11b5   :  { %v1322_v47 = vadd.f32 1.0, %v2362_v46  ;;  %v2364_v48 = vpop.eup %2363 }
0x11b6   :  { %v1389_v49 = vadd.f32 1.0, %v2364_v48 }
0x11b7   :  { %2365 = vrcp.f32 %v1322_v47 }
0x11b8   :  { %2367 = vrcp.f32 %v1389_v49 }
0x11c1   :  { %v2366_v35 = vpop.eup %2365 }
0x11c2   :  { %v2368_v51 = vpop.eup %2367  ;;  %v1326_v54 = vmul.f32 %v2366_v35, %v2814_v10 }
0x11c3   :  { %v1393_v57 = vmul.f32 %v2368_v51, %v2816_v11  ;;  %v2402_v11 = vld [vmem:[%s2964_s2 + $0x8] sm:$0xff]  }
0x1221   :  { %v1329_v50 = vpop.permute.xlu0 %1328 }
0x1222   :  { %v1331_v44 = vmul.f32 %v2366_v35, %v1329_v50 }
0x1224   :  { %1333 = vrot.lane.b32.xlu0 %v1331_v44, %s2458_s3 }
0x1226   :  { %v1396_v52 = vpop.permute.xlu1 %1395 }
0x1227   :  { %v1398_v53 = vmul.f32 %v2368_v51, %v1396_v52 }
0x1229   :  { %1400 = vrot.lane.b32.xlu1 %v1398_v53, %s2458_s3 }
0x1296   :  { %v1334_v55 = vpop.permute.xlu0 %1333 }
0x1297   :  { %v2852_v56 = vadd.f32 %v1334_v55, %v1326_v54 }
0x1299   :  { %2369 = vtanh.f32 %v2852_v56 }
0x129b   :  { %v1401_v62 = vpop.permute.xlu1 %1400 }
0x129c   :  { %v2856_v63 = vadd.f32 %v1401_v62, %v1393_v57 }
0x129e   :  { %2371 = vtanh.f32 %v2856_v63 }
0x12a3   :  { %v2370_v41 = vpop.eup %2369 }
0x12a4   :  { %1339 = vrot.lane.b32.xlu0 %v2370_v41, %s2458_s3 }
0x12a8   :  { %v2372_v1 = vpop.eup %2371 }
0x12a9   :  { %1406 = vrot.lane.b32.xlu1 %v2372_v1, %s2458_s3 }
0x1316   :  { %v1340_v2 = vpop.permute.xlu0 %1339 }
0x1317   :  { %v1342_v3 = vmul.f32 %v2366_v35, %v1340_v2  ;;  %v2403_v2 = vld [vmem:[%s2968_s6] ss:$0 sm:$0xff] }
0x1319   :  { %v1411_v4 = vpack.c.bf16 %v1342_v3, %v1342_v3 }
0x131b   :  { %1413 = vrot.lane.b32.xlu0 %v1411_v4, %s2453_s19  ;;  %v1407_v5 = vpop.permute.xlu1 %1406 }
0x131c   :  { %v1409_v6 = vmul.f32 %v2368_v51, %v1407_v5 }
0x131e   :  { %v1410_v7 = vpack.c.bf16 %v1409_v6, %v1409_v6 }
0x1320   :  { %1459 = vrot.lane.b32.xlu1 %v1410_v7, %s2453_s19 }
0x138d   :  { %v1414_v9 = vpop.permute.xlu0 %1413 }
0x138e   :  { %2174 = vmatmul.mubr.msk.bf16.vlgmr.msra.gmra.mrb[48].mxu1 %vm91_vm1, %v1414_v9 }
0x138f   :  { %2186 = vmatpush3.bf16.msra.mxu1 %v2401_v37  ;;  %2189 = vmatprep.mubr.msk.bf16.mxu1 %vm2456_vm0, %v2455_v0 }
0x1390   :  { %2187 = vmatprep.subr.bf16.mxu1 %v2455_v0 }
0x1392   :  { %v1460_v10 = vpop.permute.xlu1 %1459 }
0x1393   :  { %2188 = vmatpush3.bf16.msra.mxu1 %v2402_v11  ;;  %2182 = vmatmul.mubr.msk.bf16.vlgmr.msra.gmra.mrb[36].mxu0 %vm91_vm1, %v1460_v10 }
0x1394   :  { %2201 = vmatprep.subr.bf16.mxu1 %v2455_v0  ;;  %2194 = vmatpush3.bf16.msra.mxu0 %v2602_v58 }
0x1395   :  { %2195 = vmatprep.subr.bf16.mxu0 %v2455_v0  ;;  %2197 = vmatprep.mubr.msk.bf16.mxu0 %vm2456_vm0, %v2455_v0 }
0x1396   :  { %2190 = vmatmul.mubr.msk.bf16.vlgmr.msra.gmra.mrb[52].mxu1 %vm91_vm1, %v1460_v10 }
0x1397   :  { %2202 = vmatpush3.bf16.msra.mxu1 %v2607_v59  ;;  %2205 = vmatprep.mubr.msk.bf16.mxu1 %vm2456_vm0, %v2455_v0 }
0x1398   :  { %2203 = vmatprep.subr.bf16.mxu1 %v2455_v0  ;;  %2196 = vmatpush3.bf16.msra.mxu0 %v2610_v60 }
0x1399   :  { %2209 = vmatprep.subr.bf16.mxu0 %v2455_v0 }
0x139b   :  { %2204 = vmatpush3.bf16.msra.mxu1 %v2616_v61 }
0x1461   :  { %v1452_v58 = vpop.f32.mrb[48].mxu1 }
0x1462   :  { %v2175_v12 = vpop.f32.mrb[49].mxu1 }
0x1463   :  { %v1455_v13 = vpop.f32.mrb[50].mxu1  ;;  %v2245_v12 = vld [vmem:[%s2969_s7] sm:$0xff]  }
0x1464   :  { %v2176_v14 = vpop.f32.mrb[51].mxu1  ;;  %v2246_v13 = vld [vmem:[%s2969_s7 + $0x8] sm:$0xff]  }
0x1465   :  { %v2247_v14 = vld [vmem:[%s2969_s7 + $0x10] sm:$0xff]  }
0x1466   :  { %v1498_v15 = vpop.f32.mrb[36].mxu0 }
0x1467   :  { %v1499_v31 = vadd.f32 %v1498_v15, %v1452_v58  ;;  %v2183_v17 = vpop.f32.mrb[37].mxu0  ;;  %v2248_v15 = vld [vmem:[%s2969_s7 + $0x18] sm:$0xff]  }
0x1468   :  { %v1501_v18 = vpop.f32.mrb[38].mxu0 }
0x1469   :  { %v1504_v59 = vadd.f32 %v2649_v8, %v1499_v31  ;;  %v1565_v19 = vpop.f32.mrb[52].mxu1  ;;  %v2184_v20 = vpop.f32.mrb[39].mxu0 }
0x146a   :  { %v1571_v21 = vadd.f32 %v1565_v19, %v2593_v39  ;;  %v2191_v16 = vpop.f32.mrb[53].mxu1  ;;  %v2250_v19 = vld [vmem:[%s2969_s7 + $0x28] sm:$0xff]   ;;  %v2251_v20 = vld [vmem:[%s2969_s7 + $0x30] sm:$0xff]  }
0x146b   :  { %2373 = vtanh.f32 %v1504_v59  ;;  %v1568_v60 = vpop.f32.mrb[54].mxu1  ;;  %v1903_v24 = vmul.f32 -1.442695, %v1504_v59  ;;  %v2249_v59 = vld [vmem:[%s2969_s7 + $0x20] sm:$0xff]   ;;  %v2252_v16 = vld [vmem:[%s2969_s7 + $0x38] sm:$0xff]  }
0x146c   :  { %2375 = vtanh.f32 %v1571_v21  ;;  %v2192_v23 = vpop.f32.mrb[55].mxu1  ;;  %v1905_v28 = vmul.f32 -1.442695, %v1571_v21 }
0x146d   :  { %2377 = vpow2.f32 %v1903_v24 }
0x146e   :  { %2379 = vpow2.f32 %v1905_v28 }
0x1475   :  { %v2374_v61 = vpop.eup %2373 }
0x1476   :  { %v2376_v22 = vpop.eup %2375  ;;  %1514 = vrot.lane.b32.xlu0 %v2374_v61, %s2458_s3 }
0x1477   :  { %1581 = vrot.lane.b32.xlu1 %v2376_v22, %s2458_s3  ;;  %v2378_v8 = vpop.eup %2377 }
0x1478   :  { %v2380_v25 = vpop.eup %2379  ;;  %v1508_v26 = vadd.f32 1.0, %v2378_v8 }
0x1479   :  { %v1575_v27 = vadd.f32 1.0, %v2380_v25 }
0x147a   :  { %2381 = vrcp.f32 %v1508_v26  ;;  %v1909_v26 = vld [vmem:[%s2970_s8] ss:$0 sm:$0xff] }
0x147b   :  { %2383 = vrcp.f32 %v1575_v27 }
0x1484   :  { %v2382_v39 = vpop.eup %2381 }
0x1485   :  { %v2384_v29 = vpop.eup %2383  ;;  %v1512_v36 = vmul.f32 %v2382_v39, %v2852_v56 }
0x1486   :  { %v1579_v38 = vmul.f32 %v2384_v29, %v2856_v63 }
0x14e8   :  { %v1515_v30 = vpop.permute.xlu0 %1514 }
0x14e9   :  { %v1582_v32 = vpop.permute.xlu1 %1581  ;;  %v1517_v33 = vmul.f32 %v2382_v39, %v1515_v30 }
0x14ea   :  { %v1584_v34 = vmul.f32 %v2384_v29, %v1582_v32 }
0x14eb   :  { %1519 = vrot.lane.b32.xlu0 %v1517_v33, %s2458_s3 }
0x14ec   :  { %1586 = vrot.lane.b32.xlu1 %v1584_v34, %s2458_s3 }
0x155d   :  { %v1520_v40 = vpop.permute.xlu0 %1519 }
0x155e   :  { %v1587_v42 = vpop.permute.xlu1 %1586  ;;  %v1522_v43 = vadd.f32 %v1520_v40, %v1512_v36 }
0x155f   :  { %v1589_v45 = vadd.f32 %v1587_v42, %v1579_v38 }
0x1560   :  { %2385 = vtanh.f32 %v1522_v43 }
0x1561   :  { %2387 = vtanh.f32 %v1589_v45 }
0x156a   :  { %v2386_v46 = vpop.eup %2385 }
0x156b   :  { %v2895_v47 = vpop.eup %2387  ;;  %1525 = vrot.lane.b32.xlu0 %v2386_v46, %s2458_s3 }
0x156c   :  { %1592 = vrot.lane.b32.xlu1 %v2895_v47, %s2458_s3 }
0x15dd   :  { %v1526_v48 = vpop.permute.xlu0 %1525 }
0x15de   :  { %v1593_v49 = vpop.permute.xlu1 %1592  ;;  %v1528_v35 = vmul.f32 %v2382_v39, %v1526_v48 }
0x15df   :  { %v1595_v50 = vmul.f32 %v2384_v29, %v1593_v49 }
0x15e0   :  { %v1597_v44 = vpack.c.bf16 %v1528_v35, %v1528_v35 }
0x15e1   :  { %v1596_v51 = vpack.c.bf16 %v1595_v50, %v1595_v50 }
0x15e2   :  { %1599 = vrot.lane.b32.xlu0 %v1597_v44, %s2453_s19 }
0x15e3   :  { %1645 = vrot.lane.b32.xlu1 %v1596_v51, %s2453_s19 }
0x1654   :  { %v1600_v52 = vpop.permute.xlu0 %1599 }
0x1655   :  { %v1646_v53 = vpop.permute.xlu1 %1645  ;;  %2198 = vmatmul.mubr.msk.bf16.vlgmr.msra.gmra.mrb[40].mxu0 %vm91_vm1, %v1600_v52 }
0x1656   :  { %2206 = vmatmul.mubr.msk.bf16.vlgmr.msra.gmra.mrb[56].mxu1 %vm91_vm1, %v1646_v53  ;;  %2225 = vmatprep.mubr.msk.bf16.mxu0 %vm2456_vm0, %v2455_v0 }
0x1657   :  { %2210 = vmatpush3.bf16.msra.mxu0 %v2245_v12 }
0x1658   :  { %2211 = vmatprep.subr.bf16.mxu0 %v2455_v0 }
0x165b   :  { %2212 = vmatpush3.bf16.msra.mxu0 %v2246_v13 }
0x165c   :  { %2213 = vmatprep.subr.bf16.mxu0 %v2455_v0 }
0x165f   :  { %2214 = vmatpush3.bf16.msra.mxu0 %v2247_v14 }
0x1660   :  { %2215 = vmatprep.subr.bf16.mxu0 %v2455_v0 }
0x1663   :  { %2216 = vmatpush3.bf16.msra.mxu0 %v2248_v15 }
0x1664   :  { %2217 = vmatprep.subr.bf16.mxu0 %v2455_v0 }
0x1667   :  { %2218 = vmatpush3.bf16.msra.mxu0 %v2249_v59 }
0x1668   :  { %2219 = vmatprep.subr.bf16.mxu0 %v2455_v0 }
0x166b   :  { %2220 = vmatpush3.bf16.msra.mxu0 %v2250_v19 }
0x166c   :  { %2221 = vmatprep.subr.bf16.mxu0 %v2455_v0 }
0x166f   :  { %2222 = vmatpush3.bf16.msra.mxu0 %v2251_v20 }
0x1670   :  { %2223 = vmatprep.subr.bf16.mxu0 %v2455_v0 }
0x1673   :  { %2224 = vmatpush3.bf16.msra.mxu0 %v2252_v16 }
0x1728   :  { %v1638_v54 = vpop.f32.mrb[40].mxu0 }
0x1729   :  { %v1684_v55 = vpop.f32.mrb[56].mxu1  ;;  %v2199_v56 = vpop.f32.mrb[41].mxu0 }
0x172a   :  { %v1685_v57 = vadd.f32 %v1684_v55, %v1638_v54  ;;  %v2207_v62 = vpop.f32.mrb[57].mxu1  ;;  %v1641_v63 = vpop.f32.mrb[42].mxu0 }
0x172b   :  { %v1687_v41 = vpop.f32.mrb[58].mxu1  ;;  %v2200_v1 = vpop.f32.mrb[43].mxu0 }
0x172c   :  { %v1690_v3 = vadd.f32 %v2403_v2, %v1685_v57  ;;  %v2208_v4 = vpop.f32.mrb[59].mxu1 }
0x172e   :  { %2389 = vtanh.f32 %v1690_v3  ;;  %v1908_v6 = vmul.f32 -1.442695, %v1690_v3 }
0x1730   :  { %2391 = vpow2.f32 %v1908_v6 }
0x1738   :  { %v2390_v5 = vpop.eup %2389 }
0x1739   :  { %1700 = vrot.lane.b32.xlu0 %v2390_v5, %s2458_s3 }
0x173a   :  { %v2392_v7 = vpop.eup %2391 }
0x173b   :  { %v1694_v9 = vadd.f32 1.0, %v2392_v7 }
0x173d   :  { %2393 = vrcp.f32 %v1694_v9 }
0x173e   :  { %2395 = vtanh.f32 %v1595_v50 }
0x1747   :  { %v2394_v37 = vpop.eup %2393 }
0x1748   :  { %v2396_v58 = vpop.eup %2395  ;;  %v1698_v31 = vmul.f32 %v2394_v37, %v1522_v43 }
0x17ab   :  { %v1701_v10 = vpop.permute.xlu0 %1700 }
0x17ac   :  { %v1703_v11 = vmul.f32 %v2394_v37, %v1701_v10 }
0x17ae   :  { %1705 = vrot.lane.b32.xlu1 %v1703_v11, %s2458_s3 }
0x17b2   :  { %1718 = vrot.lane.b32.xlu1 %v2396_v58, %s2453_s19 }
0x1820   :  { %v1706_v17 = vpop.permute.xlu1 %1705 }
0x1821   :  { %v1708_v18 = vadd.f32 %v1706_v17, %v1698_v31 }
0x1823   :  { %2397 = vtanh.f32 %v1708_v18 }
0x1824   :  { %v1719_v61 = vpop.permute.xlu1 %1718 }
0x1825   :  { %v1724_v0 = vsel %vm91_vm1, %v1719_v61, %v2895_v47 }
0x182d   :  { %v2398_v21 = vpop.eup %2397 }
0x182e   :  { %1711 = vrot.lane.b32.xlu0 %v2398_v21, %s2458_s3 }
0x1832   :  { %1721 = vrot.lane.b32.xlu0 %v2398_v21, %s2453_s19  ;;  %s2459_s19 = smov [#allocation6]  }
0x1833   :  { %s1848_s5 = sshll.u32 %s2459_s19, 4  ;;  %s1849_s5 = int_to_ptr.vmem [resolvable:$true] %s1848_s5 }
0x1834   :  { %s2426_s28 = scalar_lea.vmem %s1849_s5, 128  ;;  %p2431_p9 = scmp.lt.s32.totalorder %s1849_s5, %s1849_s5 }
0x1835   :  { %p2427_p8 = scmp.ne.s32.totalorder %s1849_s5, %s2426_s28  ;;  %p2432_p10 = scmp.lt.s32.totalorder %s2426_s28, %s2426_s28 }
0x1837   :  { %p2433_p11 = por %p2432_p10, %p2431_p9 }
0x1839   :  { %p2434_p12 = pnand %p2433_p11, %p2427_p8 }
0x18a0   :  { %v1712_v60 = vpop.permute.xlu0 %1711 }
0x18a1   :  { %v1714_v23 = vmul.f32 %v2394_v37, %v1712_v60 }
0x18a3   :  { %2399 = vtanh.f32 %v1714_v23 }
0x18a4   :  { %v1722_v28 = vpop.permute.xlu0 %1721 }
0x18ad   :  { %v2400_v22 = vpop.eup %2399 }
0x18ae   :  { %v1726_v24 = vsel %vm1725_vm2, %v1724_v0, %v2400_v22 }
0x18af   :  { %v1728_v8 = vsel %vm1727_vm3, %v1726_v24, %v1722_v28 }
0x18b0   :  { %v1729_v25 = vpack.c.bf16 %v1728_v8, %v1728_v8 }
0x18b2   :  { %2226 = vmatmul.mubr.bf16.vlgmr.msra.gmra.mrb[44].mxu0 %v1729_v25 }
0x1985   :  { %v1835_v27 = vpop.f32.mrb[44].mxu0 }
0x1986   :  { %v1836_v39 = vadd.f32 %v1909_v26, %v1835_v27  ;;  %v2227_v30 = vpop.f32.mrb[45].mxu0 }
0x1987   :  { %v1838_v29 = vpop.f32.mrb[46].mxu0 }
0x1988   :  { %1841 = vst [vmem:[#allocation6] sm:$0xff] %v1836_v39  ;;  %v2228_v32 = vpop.f32.mrb[47].mxu0 }
0x1989   :  { %2437 = shalt.err (!%p2434_p12)
}
0x198a   :  { %s2438_s8 = scalar_lea.hbm %s2971_s9, 128 }
0x198b   :  { %p2439_p13 = scmp.ne.s32.totalorder %s2971_s9, %s2438_s8  ;;  %p2442_p0 = scmp.lt.u32.totalorder %s2438_s8, %s2971_s9 }
0x198d   :  { %p2444_p1 = pnand %p2442_p0, %p2439_p13 }
0x198f   :  { %2447 = shalt.err (!%p2444_p1)
}
0x1990   :  { %1851 = dma.vmem_to_hbm [thread:$0]  %s1849_s5, 128, %s2971_s9, [#allocation5]  }
0x1991   :  { %2450 = dma.done.wait [#allocation5], 128  }
0x1992   :  { %2451 = vsyncadd [#allocation5], 4294967168 }
0x1993   :  { %1855 = vsyncpa [#allocation4], 1 }
0x1994   :  { %1856 = vsyncpa [#allocation5], 1 }

</bundles_post_ra>
